<compile_context>
chip_gen: v7x
topology: tpu7x:2x2x1
jax: 0.10.0
libtpu: 0.0.40
codegen_flags: <defaults>
</compile_context>

<pallas_src>
import jax
import jax.numpy as jnp
from jax import lax
from jax.experimental import pallas as pl
from jax.experimental.pallas import tpu as pltpu


# ----------------------------- model config ---------------------------------
B = 2            # batch
L = 8            # sequence length (context length)
D = 128          # transformer width  (lane-dense: multiple of 128)
H = 4            # attention heads
DH = D // H      # head dim
FF = 4 * D       # MLP hidden
NLAYERS = 2      # transformer blocks
VOCAB = 64       # vocab size
P = 128          # text projection dim (lane-dense)
BL = B * L
HB = H * B       # batched-head einsum batch size
OROWS = max(8, ((B + 7) // 8) * 8)   # sublane-aligned output rows -> unmasked store
EPS = 1e-5
NEG_INF = -1e9   # additive causal mask (safe: max-subtraction before exp)


def _layer_norm(v, w, b):
    # v: [*, D] f32, w/b: [1, D] f32
    mu = jnp.mean(v, axis=-1, keepdims=True)
    var = jnp.mean((v - mu) ** 2, axis=-1, keepdims=True)
    return (v - mu) * lax.rsqrt(var + EPS) * w + b


# ------------------------- fused encoder kernel ------------------------------
def encoder_kernel(x_emb_ref,                                 # [BL, D] f32
                   eot_oh_ref,                                # [OROWS, BL] f32 one-hot
                   ln1_w_ref, ln1_b_ref, qkv_w_ref, qkv_b_ref,
                   proj_w_ref, proj_b_ref, ln2_w_ref, ln2_b_ref,
                   fc1_w_ref, fc1_b_ref, fc2_w_ref, fc2_b_ref,
                   lnf_w_ref, lnf_b_ref, tproj_ref,
                   o_ref,                                     # [OROWS, P] f32
                   x_scratch,                                 # VMEM [BL, D] f32
                   bias_scratch):                             # VMEM [1, L, L] f32
    layer = pl.program_id(0)

    # Load embedded tokens + build the causal bias exactly once.
    @pl.when(layer == 0)
    def _():
        x_scratch[...] = x_emb_ref[...]
        row = lax.broadcasted_iota(jnp.int32, (1, L, L), 1)
        col = lax.broadcasted_iota(jnp.int32, (1, L, L), 2)
        bias_scratch[...] = jnp.where(col <= row, 0.0, NEG_INF).astype(jnp.float32)

    x = x_scratch[...]                                        # [BL, D] f32

    # ---- pre-LN causal multi-head self-attention (heads batched) ----
    h = _layer_norm(x, ln1_w_ref[...], ln1_b_ref[...])
    qkv = jnp.dot(h.astype(jnp.bfloat16), qkv_w_ref[...],
                  preferred_element_type=jnp.float32) + qkv_b_ref[...]  # [BL, 3D]

    q = qkv[:, 0:D].reshape(B, L, D).astype(jnp.bfloat16)     # aligned 128-lane slices
    k = qkv[:, D:2 * D].reshape(B, L, D).astype(jnp.bfloat16)
    v = qkv[:, 2 * D:3 * D].reshape(B, L, D).astype(jnp.bfloat16)

    # Fold heads into the einsum batch dim: [H*B, L, DH] (head-major ordering).
    q_hb = jnp.concatenate([q[:, :, hh * DH:(hh + 1) * DH] for hh in range(H)], axis=0)
    k_hb = jnp.concatenate([k[:, :, hh * DH:(hh + 1) * DH] for hh in range(H)], axis=0)
    v_hb = jnp.concatenate([v[:, :, hh * DH:(hh + 1) * DH] for hh in range(H)], axis=0)

    # NOTE: 1/sqrt(DH) is folded into the Q slab of qkv_w/qkv_b at init time.
    s = jnp.einsum('bqd,bkd->bqk', q_hb, k_hb,
                   preferred_element_type=jnp.float32)        # [HB, L, L]
    s = s + bias_scratch[...]                                 # broadcast over batch
    s = s - jnp.max(s, axis=-1, keepdims=True)                # keep before exp!
    p = jnp.exp(s)
    p = p * pl.reciprocal(jnp.sum(p, axis=-1, keepdims=True), approx=True)
    o_hb = jnp.einsum('bqk,bkd->bqd', p.astype(jnp.bfloat16), v_hb,
                      preferred_element_type=jnp.float32)     # [HB, L, DH]

    # Lane-concat heads back -> single full-depth (K=128) output projection.
    o_cat = jnp.concatenate(
        [o_hb[hh * B:(hh + 1) * B].reshape(BL, DH) for hh in range(H)], axis=-1)
    attn = jnp.dot(o_cat.astype(jnp.bfloat16), proj_w_ref[...],
                   preferred_element_type=jnp.float32)        # [BL, D]
    x = x + attn + proj_b_ref[...]                            # residual

    # ---- pre-LN MLP (QuickGELU, as in original CLIP) ----
    h2 = _layer_norm(x, ln2_w_ref[...], ln2_b_ref[...])
    m = jnp.dot(h2.astype(jnp.bfloat16), fc1_w_ref[...],
                preferred_element_type=jnp.float32) + fc1_b_ref[...]
    m = m * jax.nn.sigmoid(1.702 * m)                         # QuickGELU, f32
    m = jnp.dot(m.astype(jnp.bfloat16), fc2_w_ref[...],
                preferred_element_type=jnp.float32) + fc2_b_ref[...]
    x = x + m
    x_scratch[...] = x                                        # carry to next layer

    # ---- last layer: EOT one-hot selection + final LN + text projection ----
    @pl.when(layer == NLAYERS - 1)
    def _():
        # One-hot selection matmul (exact: operands are 0/1); rows >= B are zero
        # padding so the [OROWS, P] store is an unmasked full-sublane vst.
        xe = jnp.dot(eot_oh_ref[...], x, preferred_element_type=jnp.float32)  # [OROWS, D]
        hf = _layer_norm(xe, lnf_w_ref[...], lnf_b_ref[...])
        o_ref[...] = jnp.dot(hf.astype(jnp.bfloat16), tproj_ref[...],
                             preferred_element_type=jnp.float32)


def encode_text(input_ids, params):
    """input_ids: [B, L] int32; returns [B, P] f32 text features."""
    # Embedding lookup + positional embedding (plain-JAX glue: gather).
    x = params["token_emb"][input_ids] + params["pos_emb"][None, :, :]   # [B,L,D]
    x = x.reshape(BL, D).astype(jnp.float32)

    # EOT = argmax token id (CLIP convention: EOT has the largest BPE id).
    eot_idx = jnp.argmax(input_ids, axis=-1).astype(jnp.int32)           # [B]
    flat = jnp.arange(B, dtype=jnp.int32) * L + eot_idx                  # [B]
    onehot_b = jax.nn.one_hot(flat, BL, dtype=jnp.float32)               # [B, BL]
    eot_oh = jnp.zeros((OROWS, BL), jnp.float32).at[:B, :].set(onehot_b)

    lp = params["layers"]
    stacked = [lp["ln1_w"], lp["ln1_b"], lp["qkv_w"], lp["qkv_b"],
               lp["proj_w"], lp["proj_b"], lp["ln2_w"], lp["ln2_b"],
               lp["fc1_w"], lp["fc1_b"], lp["fc2_w"], lp["fc2_b"]]
    heads = [params["lnf_w"], params["lnf_b"], params["text_proj"]]

    def stacked_spec(w):
        # Leading layer axis squeezed out; index_map picks layer `l`'s slab so
        # Pallas double-buffers (prefetches) the next layer's weights.
        return pl.BlockSpec((None,) + w.shape[1:],
                            lambda l, _nd=w.ndim: (l,) + (0,) * (_nd - 1))

    def full_spec(w):
        # Constant index across the grid -> loaded once, kept resident.
        # TODO(synk): at real CLIP widths mark these pipeline_mode=pl.Buffered(1)
        # so they are not double-buffered (halves their VMEM footprint).
        return pl.BlockSpec(w.shape, lambda l, _nd=w.ndim: (0,) * _nd)

    grid_spec = pltpu.PrefetchScalarGridSpec(
        num_scalar_prefetch=0,
        grid=(NLAYERS,),
        in_specs=[full_spec(x), full_spec(eot_oh)]
                 + [stacked_spec(w) for w in stacked]
                 + [full_spec(w) for w in heads],
        out_specs=pl.BlockSpec((OROWS, P), lambda l: (0, 0)),
        scratch_shapes=[pltpu.VMEM((BL, D), jnp.float32),     # resident activation
                        pltpu.VMEM((1, L, L), jnp.float32)],  # resident causal bias
    )

    out = pl.pallas_call(
        encoder_kernel,
        out_shape=jax.ShapeDtypeStruct((OROWS, P), jnp.float32),
        grid_spec=grid_spec,
        compiler_params=pltpu.CompilerParams(
            dimension_semantics=("arbitrary",),   # layer loop is sequential
            vmem_limit_bytes=32 * 1024 * 1024),
    )(x, eot_oh, *stacked, *heads)
    return out[:B]                                             # strip sublane padding


# ------------------------------ parameters -----------------------------------
def init_params(key):
    ks = jax.random.split(key, 7)

    def nrm(k, shape, scale=0.02, dtype=jnp.float32):
        return (scale * jax.random.normal(k, shape, jnp.float32)).astype(dtype)

    # NOTE: the 1/sqrt(DH) attention scale is folded into the Q slab of
    # qkv_w / qkv_b here (mathematically identical, zero runtime cost).
    attn_scale = 1.0 / (DH ** 0.5)
    qkv_w = 0.02 * jax.random.normal(ks[3], (NLAYERS, D, 3 * D), jnp.float32)
    qkv_w = qkv_w.at[:, :, 0:D].multiply(attn_scale)
    qkv_b = jnp.zeros((NLAYERS, 1, 3 * D), jnp.float32)
    qkv_b = qkv_b.at[:, :, 0:D].multiply(attn_scale)

    return {
        "token_emb": nrm(ks[0], (VOCAB, D)),
        "pos_emb": nrm(ks[1], (L, D), scale=0.01),
        "lnf_w": jnp.ones((1, D), jnp.float32),
        "lnf_b": jnp.zeros((1, D), jnp.float32),
        "text_proj": nrm(ks[2], (D, P), dtype=jnp.bfloat16),
        "layers": {
            "ln1_w": jnp.ones((NLAYERS, 1, D), jnp.float32),
            "ln1_b": jnp.zeros((NLAYERS, 1, D), jnp.float32),
            "qkv_w": qkv_w.astype(jnp.bfloat16),
            "qkv_b": qkv_b,
            "proj_w": nrm(ks[4], (NLAYERS, D, D), dtype=jnp.bfloat16),
            "proj_b": jnp.zeros((NLAYERS, 1, D), jnp.float32),
            "ln2_w": jnp.ones((NLAYERS, 1, D), jnp.float32),
            "ln2_b": jnp.zeros((NLAYERS, 1, D), jnp.float32),
            "fc1_w": nrm(ks[5], (NLAYERS, D, FF), dtype=jnp.bfloat16),
            "fc1_b": jnp.zeros((NLAYERS, 1, FF), jnp.float32),
            "fc2_w": nrm(ks[6], (NLAYERS, FF, D), dtype=jnp.bfloat16),
            "fc2_b": jnp.zeros((NLAYERS, 1, D), jnp.float32),
        },
    }


# ------------------------------- forward -------------------------------------
def text_encoder_forward(input_ids, params):
    """Mirrors TextEncoder.forward: dict or tensor input, squeeze dim=1 if 3-D,
    then self.model.encode_text(input_ids)."""
    if isinstance(input_ids, dict):
        ids = input_ids["input_ids"]
        if ids.ndim == 3:
            ids = jnp.squeeze(ids, axis=1)                    # [B,1,L] -> [B,L]
        # attention_mask is squeezed/ignored by CLIP's encode_text.
    else:
        ids = input_ids
        if ids.ndim == 3:
            ids = jnp.squeeze(ids, axis=1)
    ids = ids.astype(jnp.int32)
    return encode_text(ids, params)                           # [B, P]


# --------------------------------- main ---------------------------------------
if __name__ == "__main__":
    key = jax.random.PRNGKey(0)
    pkey, ikey = jax.random.split(key)

    params = init_params(pkey)

    # 3-D input_ids [B, 1, L] exercises the squeeze(dim=1) path of the module.
    input_ids = jax.random.randint(ikey, (B, 1, L), 0, VOCAB, dtype=jnp.int32)

    out = jax.jit(text_encoder_forward)(input_ids, params)
    out = jax.block_until_ready(out)

    assert out.shape == (B, P), out.shape
    assert out.dtype == jnp.float32, out.dtype
    assert bool(jnp.all(jnp.isfinite(out)))
    print("KERNEL_OK")
</pallas_src>

<mosaic_0001>
module attributes {stable_mosaic.version = 11 : i64} {
  func.func @encoder_kernel(%arg0: i32, %arg1: memref<16x128xf32, #tpu.memory_space<vmem>>, %arg2: memref<8x16xf32, #tpu.memory_space<vmem>>, %arg3: memref<1x1x128xf32, #tpu.memory_space<vmem>>, %arg4: memref<1x1x128xf32, #tpu.memory_space<vmem>>, %arg5: memref<1x128x384xbf16, #tpu.memory_space<vmem>>, %arg6: memref<1x1x384xf32, #tpu.memory_space<vmem>>, %arg7: memref<1x128x128xbf16, #tpu.memory_space<vmem>>, %arg8: memref<1x1x128xf32, #tpu.memory_space<vmem>>, %arg9: memref<1x1x128xf32, #tpu.memory_space<vmem>>, %arg10: memref<1x1x128xf32, #tpu.memory_space<vmem>>, %arg11: memref<1x128x512xbf16, #tpu.memory_space<vmem>>, %arg12: memref<1x1x512xf32, #tpu.memory_space<vmem>>, %arg13: memref<1x512x128xbf16, #tpu.memory_space<vmem>>, %arg14: memref<1x1x128xf32, #tpu.memory_space<vmem>>, %arg15: memref<1x128xf32, #tpu.memory_space<vmem>>, %arg16: memref<1x128xf32, #tpu.memory_space<vmem>>, %arg17: memref<128x128xbf16, #tpu.memory_space<vmem>>, %arg18: memref<8x128xf32, #tpu.memory_space<vmem>>, %arg19: memref<16x128xf32, #tpu.memory_space<vmem>>, %arg20: memref<1x8x8xf32, #tpu.memory_space<vmem>>) attributes {dimension_semantics = [#tpu.dimension_semantics<arbitrary>], iteration_bounds = array<i64: 2>, scalar_prefetch = 0 : i64, scratch_operands = 2 : i64, tpu.core_type = #tpu.core_type<tc>, window_params = [{pipeline_mode = #tpu.pipeline_mode<synchronous>, transform_indices = @transform_0, window_bounds = array<i64: 16, 128>}, {pipeline_mode = #tpu.pipeline_mode<synchronous>, transform_indices = @transform_1, window_bounds = array<i64: 8, 16>}, {transform_indices = @transform_2, window_bounds = array<i64: 1, 1, 128>}, {transform_indices = @transform_3, window_bounds = array<i64: 1, 1, 128>}, {transform_indices = @transform_4, window_bounds = array<i64: 1, 128, 384>}, {transform_indices = @transform_5, window_bounds = array<i64: 1, 1, 384>}, {transform_indices = @transform_6, window_bounds = array<i64: 1, 128, 128>}, {transform_indices = @transform_7, window_bounds = array<i64: 1, 1, 128>}, {transform_indices = @transform_8, window_bounds = array<i64: 1, 1, 128>}, {transform_indices = @transform_9, window_bounds = array<i64: 1, 1, 128>}, {transform_indices = @transform_10, window_bounds = array<i64: 1, 128, 512>}, {transform_indices = @transform_11, window_bounds = array<i64: 1, 1, 512>}, {transform_indices = @transform_12, window_bounds = array<i64: 1, 512, 128>}, {transform_indices = @transform_13, window_bounds = array<i64: 1, 1, 128>}, {pipeline_mode = #tpu.pipeline_mode<synchronous>, transform_indices = @transform_14, window_bounds = array<i64: 1, 128>}, {pipeline_mode = #tpu.pipeline_mode<synchronous>, transform_indices = @transform_15, window_bounds = array<i64: 1, 128>}, {pipeline_mode = #tpu.pipeline_mode<synchronous>, transform_indices = @transform_16, window_bounds = array<i64: 128, 128>}, {pipeline_mode = #tpu.pipeline_mode<synchronous>, transform_indices = @transform_17, window_bounds = array<i64: 8, 128>}]} {
    %c0_i32 = arith.constant 0 : i32
    %0 = arith.cmpi eq, %arg0, %c0_i32 : i32
    %1 = arith.extui %0 : i1 to i32
    %c0_i32_0 = arith.constant 0 : i32
    %2 = arith.cmpi ne, %1, %c0_i32_0 : i32
    scf.if %2 {
      %c0_63 = arith.constant 0 : index
      %c0_64 = arith.constant 0 : index
      %151 = vector.load %arg1[%c0_63, %c0_64] : memref<16x128xf32, #tpu.memory_space<vmem>>, vector<16x128xf32>
      %c0_65 = arith.constant 0 : index
      %c0_66 = arith.constant 0 : index
      %152 = vector.load %arg19[%c0_65, %c0_66] : memref<16x128xf32, #tpu.memory_space<vmem>>, vector<16x128xf32>
      tpu.vector_store %arg19[%c0_65, %c0_66], %151 {strides = array<i32>} : memref<16x128xf32, #tpu.memory_space<vmem>>, vector<16x128xf32>,
      %153 = tpu.iota {dimensions = array<i32: 1>} : vector<1x8x8xi32>
      %154 = tpu.iota {dimensions = array<i32: 2>} : vector<1x8x8xi32>
      %155 = arith.cmpi sle, %154, %153 : vector<1x8x8xi32>
      %cst_67 = arith.constant 0.000000e+00 : f32
      %cst_68 = arith.constant -1.000000e+09 : f32
      %156 = vector.broadcast %cst_67 : f32 to vector<1x8x8xf32>
      %157 = vector.broadcast %cst_68 : f32 to vector<1x8x8xf32>
      %158 = arith.select %155, %156, %157 : vector<1x8x8xi1>, vector<1x8x8xf32>
      %c0_69 = arith.constant 0 : index
      %c0_70 = arith.constant 0 : index
      %c0_71 = arith.constant 0 : index
      %159 = vector.load %arg20[%c0_69, %c0_70, %c0_71] : memref<1x8x8xf32, #tpu.memory_space<vmem>>, vector<1x8x8xf32>
      tpu.vector_store %arg20[%c0_69, %c0_70, %c0_71], %158 {strides = array<i32>} : memref<1x8x8xf32, #tpu.memory_space<vmem>>, vector<1x8x8xf32>,
    } else {
    }
    %c0 = arith.constant 0 : index
    %c0_1 = arith.constant 0 : index
    %3 = vector.load %arg19[%c0, %c0_1] : memref<16x128xf32, #tpu.memory_space<vmem>>, vector<16x128xf32>
    %c0_2 = arith.constant 0 : index
    %c0_3 = arith.constant 0 : index
    %c0_4 = arith.constant 0 : index
    %4 = vector.load %arg3[%c0_2, %c0_3, %c0_4] : memref<1x1x128xf32, #tpu.memory_space<vmem>>, vector<1x1x128xf32>
    %5 = vector.shape_cast %4 : vector<1x1x128xf32> to vector<1x128xf32>
    %c0_5 = arith.constant 0 : index
    %c0_6 = arith.constant 0 : index
    %c0_7 = arith.constant 0 : index
    %6 = vector.load %arg4[%c0_5, %c0_6, %c0_7] : memref<1x1x128xf32, #tpu.memory_space<vmem>>, vector<1x1x128xf32>
    %7 = vector.shape_cast %6 : vector<1x1x128xf32> to vector<1x128xf32>
    %cst = arith.constant dense<0.000000e+00> : vector<16xf32>
    %8 = vector.multi_reduction <add>, %3, %cst [1] : vector<16x128xf32> to vector<16xf32>
    %9 = vector.shape_cast %8 : vector<16xf32> to vector<16x1xf32>
    %cst_8 = arith.constant 1.280000e+02 : f32
    %10 = vector.broadcast %cst_8 : f32 to vector<16x1xf32>
    %11 = arith.divf %9, %10 : vector<16x1xf32>
    %12 = vector.broadcast %11 : vector<16x1xf32> to vector<16x128xf32>
    %13 = arith.subf %3, %12 : vector<16x128xf32>
    %14 = arith.mulf %13, %13 : vector<16x128xf32>
    %cst_9 = arith.constant dense<0.000000e+00> : vector<16xf32>
    %15 = vector.multi_reduction <add>, %14, %cst_9 [1] : vector<16x128xf32> to vector<16xf32>
    %16 = vector.shape_cast %15 : vector<16xf32> to vector<16x1xf32>
    %cst_10 = arith.constant 1.280000e+02 : f32
    %17 = vector.broadcast %cst_10 : f32 to vector<16x1xf32>
    %18 = arith.divf %16, %17 : vector<16x1xf32>
    %19 = vector.broadcast %11 : vector<16x1xf32> to vector<16x128xf32>
    %20 = arith.subf %3, %19 : vector<16x128xf32>
    %cst_11 = arith.constant 9.99999974E-6 : f32
    %21 = vector.broadcast %cst_11 : f32 to vector<16x1xf32>
    %22 = arith.addf %18, %21 : vector<16x1xf32>
    %23 = math.rsqrt %22 : vector<16x1xf32>
    %24 = vector.broadcast %23 : vector<16x1xf32> to vector<16x128xf32>
    %25 = arith.mulf %20, %24 : vector<16x128xf32>
    %26 = vector.broadcast %5 : vector<1x128xf32> to vector<16x128xf32>
    %27 = arith.mulf %25, %26 : vector<16x128xf32>
    %28 = vector.broadcast %7 : vector<1x128xf32> to vector<16x128xf32>
    %29 = arith.addf %27, %28 : vector<16x128xf32>
    %30 = arith.truncf %29 : vector<16x128xf32> to vector<16x128xbf16>
    %c0_12 = arith.constant 0 : index
    %c0_13 = arith.constant 0 : index
    %c0_14 = arith.constant 0 : index
    %31 = vector.load %arg5[%c0_12, %c0_13, %c0_14] : memref<1x128x384xbf16, #tpu.memory_space<vmem>>, vector<1x128x384xbf16>
    %32 = vector.shape_cast %31 : vector<1x128x384xbf16> to vector<128x384xbf16>
    %cst_15 = arith.constant dense<0.000000e+00> : vector<16x384xf32>
    %33 = tpu.matmul %30, %32, %cst_15 {dimension_numbers = #tpu.dot_dimension_numbers<[1], [0], [0], [1], [0, 0, 1, 1], [], []>} : vector<16x128xbf16>, vector<128x384xbf16>, vector<16x384xf32> -> vector<16x384xf32>
    %c0_16 = arith.constant 0 : index
    %c0_17 = arith.constant 0 : index
    %c0_18 = arith.constant 0 : index
    %34 = vector.load %arg6[%c0_16, %c0_17, %c0_18] : memref<1x1x384xf32, #tpu.memory_space<vmem>>, vector<1x1x384xf32>
    %35 = vector.shape_cast %34 : vector<1x1x384xf32> to vector<1x384xf32>
    %36 = vector.broadcast %35 : vector<1x384xf32> to vector<16x384xf32>
    %37 = arith.addf %33, %36 : vector<16x384xf32>
    %38 = vector.extract_strided_slice %37 {offsets = [0, 0], sizes = [16, 128], strides = [1, 1]} : vector<16x384xf32> to vector<16x128xf32>
    %39 = vector.shape_cast %38 : vector<16x128xf32> to vector<2x8x128xf32>
    %40 = arith.truncf %39 : vector<2x8x128xf32> to vector<2x8x128xbf16>
    %41 = vector.extract_strided_slice %37 {offsets = [0, 128], sizes = [16, 128], strides = [1, 1]} : vector<16x384xf32> to vector<16x128xf32>
    %42 = vector.shape_cast %41 : vector<16x128xf32> to vector<2x8x128xf32>
    %43 = arith.truncf %42 : vector<2x8x128xf32> to vector<2x8x128xbf16>
    %44 = vector.extract_strided_slice %37 {offsets = [0, 256], sizes = [16, 128], strides = [1, 1]} : vector<16x384xf32> to vector<16x128xf32>
    %45 = vector.shape_cast %44 : vector<16x128xf32> to vector<2x8x128xf32>
    %46 = arith.truncf %45 : vector<2x8x128xf32> to vector<2x8x128xbf16>
    %47 = vector.extract_strided_slice %40 {offsets = [0, 0, 0], sizes = [2, 8, 32], strides = [1, 1, 1]} : vector<2x8x128xbf16> to vector<2x8x32xbf16>
    %48 = vector.extract_strided_slice %40 {offsets = [0, 0, 32], sizes = [2, 8, 32], strides = [1, 1, 1]} : vector<2x8x128xbf16> to vector<2x8x32xbf16>
    %49 = vector.extract_strided_slice %40 {offsets = [0, 0, 64], sizes = [2, 8, 32], strides = [1, 1, 1]} : vector<2x8x128xbf16> to vector<2x8x32xbf16>
    %50 = vector.extract_strided_slice %40 {offsets = [0, 0, 96], sizes = [2, 8, 32], strides = [1, 1, 1]} : vector<2x8x128xbf16> to vector<2x8x32xbf16>
    %51 = tpu.concatenate %47, %48, %49, %50 in 0 : vector<2x8x32xbf16>, vector<2x8x32xbf16>, vector<2x8x32xbf16>, vector<2x8x32xbf16> -> vector<8x8x32xbf16>
    %52 = vector.extract_strided_slice %43 {offsets = [0, 0, 0], sizes = [2, 8, 32], strides = [1, 1, 1]} : vector<2x8x128xbf16> to vector<2x8x32xbf16>
    %53 = vector.extract_strided_slice %43 {offsets = [0, 0, 32], sizes = [2, 8, 32], strides = [1, 1, 1]} : vector<2x8x128xbf16> to vector<2x8x32xbf16>
    %54 = vector.extract_strided_slice %43 {offsets = [0, 0, 64], sizes = [2, 8, 32], strides = [1, 1, 1]} : vector<2x8x128xbf16> to vector<2x8x32xbf16>
    %55 = vector.extract_strided_slice %43 {offsets = [0, 0, 96], sizes = [2, 8, 32], strides = [1, 1, 1]} : vector<2x8x128xbf16> to vector<2x8x32xbf16>
    %56 = tpu.concatenate %52, %53, %54, %55 in 0 : vector<2x8x32xbf16>, vector<2x8x32xbf16>, vector<2x8x32xbf16>, vector<2x8x32xbf16> -> vector<8x8x32xbf16>
    %57 = vector.extract_strided_slice %46 {offsets = [0, 0, 0], sizes = [2, 8, 32], strides = [1, 1, 1]} : vector<2x8x128xbf16> to vector<2x8x32xbf16>
    %58 = vector.extract_strided_slice %46 {offsets = [0, 0, 32], sizes = [2, 8, 32], strides = [1, 1, 1]} : vector<2x8x128xbf16> to vector<2x8x32xbf16>
    %59 = vector.extract_strided_slice %46 {offsets = [0, 0, 64], sizes = [2, 8, 32], strides = [1, 1, 1]} : vector<2x8x128xbf16> to vector<2x8x32xbf16>
    %60 = vector.extract_strided_slice %46 {offsets = [0, 0, 96], sizes = [2, 8, 32], strides = [1, 1, 1]} : vector<2x8x128xbf16> to vector<2x8x32xbf16>
    %61 = tpu.concatenate %57, %58, %59, %60 in 0 : vector<2x8x32xbf16>, vector<2x8x32xbf16>, vector<2x8x32xbf16>, vector<2x8x32xbf16> -> vector<8x8x32xbf16>
    "tpu.trace_start"() <{level = 10 : i32, message = "bqd,bkd->bqk"}> : () -> ()
    %cst_19 = arith.constant dense<0.000000e+00> : vector<8x8x8xf32>
    %62 = tpu.matmul %51, %56, %cst_19 {dimension_numbers = #tpu.dot_dimension_numbers<[2], [2], [1], [1], [0, 0, 0, 1, 1, 1], [0], [0]>} : vector<8x8x32xbf16>, vector<8x8x32xbf16>, vector<8x8x8xf32> -> vector<8x8x8xf32>
    "tpu.trace_stop"() : () -> ()
    %c0_20 = arith.constant 0 : index
    %c0_21 = arith.constant 0 : index
    %c0_22 = arith.constant 0 : index
    %63 = vector.load %arg20[%c0_20, %c0_21, %c0_22] : memref<1x8x8xf32, #tpu.memory_space<vmem>>, vector<1x8x8xf32>
    %64 = vector.broadcast %63 : vector<1x8x8xf32> to vector<8x8x8xf32>
    %65 = arith.addf %62, %64 : vector<8x8x8xf32>
    %cst_23 = arith.constant dense<0xFF800000> : vector<8x8xf32>
    %66 = vector.multi_reduction <maximumf>, %65, %cst_23 [2] : vector<8x8x8xf32> to vector<8x8xf32>
    %67 = vector.shape_cast %66 : vector<8x8xf32> to vector<8x8x1xf32>
    %68 = vector.broadcast %67 : vector<8x8x1xf32> to vector<8x8x8xf32>
    %69 = arith.subf %65, %68 : vector<8x8x8xf32>
    %70 = math.exp %69 : vector<8x8x8xf32>
    %cst_24 = arith.constant dense<0.000000e+00> : vector<8x8xf32>
    %71 = vector.multi_reduction <add>, %70, %cst_24 [2] : vector<8x8x8xf32> to vector<8x8xf32>
    %72 = vector.shape_cast %71 : vector<8x8xf32> to vector<8x8x1xf32>
    %73 = tpu.reciprocal %72 {approx = true} : vector<8x8x1xf32> -> vector<8x8x1xf32>
    %74 = vector.broadcast %73 : vector<8x8x1xf32> to vector<8x8x8xf32>
    %75 = arith.mulf %70, %74 : vector<8x8x8xf32>
    %76 = arith.truncf %75 : vector<8x8x8xf32> to vector<8x8x8xbf16>
    "tpu.trace_start"() <{level = 10 : i32, message = "bqk,bkd->bqd"}> : () -> ()
    %cst_25 = arith.constant dense<0.000000e+00> : vector<8x8x32xf32>
    %77 = tpu.matmul %76, %61, %cst_25 {dimension_numbers = #tpu.dot_dimension_numbers<[2], [1], [1], [2], [0, 0, 0, 1, 1, 2], [0], [0]>} : vector<8x8x8xbf16>, vector<8x8x32xbf16>, vector<8x8x32xf32> -> vector<8x8x32xf32>
    "tpu.trace_stop"() : () -> ()
    %78 = vector.extract_strided_slice %77 {offsets = [0, 0, 0], sizes = [2, 8, 32], strides = [1, 1, 1]} : vector<8x8x32xf32> to vector<2x8x32xf32>
    %79 = vector.shape_cast %78 : vector<2x8x32xf32> to vector<16x32xf32>
    %80 = vector.extract_strided_slice %77 {offsets = [2, 0, 0], sizes = [2, 8, 32], strides = [1, 1, 1]} : vector<8x8x32xf32> to vector<2x8x32xf32>
    %81 = vector.shape_cast %80 : vector<2x8x32xf32> to vector<16x32xf32>
    %82 = vector.extract_strided_slice %77 {offsets = [4, 0, 0], sizes = [2, 8, 32], strides = [1, 1, 1]} : vector<8x8x32xf32> to vector<2x8x32xf32>
    %83 = vector.shape_cast %82 : vector<2x8x32xf32> to vector<16x32xf32>
    %84 = vector.extract_strided_slice %77 {offsets = [6, 0, 0], sizes = [2, 8, 32], strides = [1, 1, 1]} : vector<8x8x32xf32> to vector<2x8x32xf32>
    %85 = vector.shape_cast %84 : vector<2x8x32xf32> to vector<16x32xf32>
    %86 = tpu.concatenate %79, %81, %83, %85 in 1 : vector<16x32xf32>, vector<16x32xf32>, vector<16x32xf32>, vector<16x32xf32> -> vector<16x128xf32>
    %87 = arith.truncf %86 : vector<16x128xf32> to vector<16x128xbf16>
    %c0_26 = arith.constant 0 : index
    %c0_27 = arith.constant 0 : index
    %c0_28 = arith.constant 0 : index
    %88 = vector.load %arg7[%c0_26, %c0_27, %c0_28] : memref<1x128x128xbf16, #tpu.memory_space<vmem>>, vector<1x128x128xbf16>
    %89 = vector.shape_cast %88 : vector<1x128x128xbf16> to vector<128x128xbf16>
    %cst_29 = arith.constant dense<0.000000e+00> : vector<16x128xf32>
    %90 = tpu.matmul %87, %89, %cst_29 {dimension_numbers = #tpu.dot_dimension_numbers<[1], [0], [0], [1], [0, 0, 1, 1], [], []>} : vector<16x128xbf16>, vector<128x128xbf16>, vector<16x128xf32> -> vector<16x128xf32>
    %91 = arith.addf %3, %90 : vector<16x128xf32>
    %c0_30 = arith.constant 0 : index
    %c0_31 = arith.constant 0 : index
    %c0_32 = arith.constant 0 : index
    %92 = vector.load %arg8[%c0_30, %c0_31, %c0_32] : memref<1x1x128xf32, #tpu.memory_space<vmem>>, vector<1x1x128xf32>
    %93 = vector.shape_cast %92 : vector<1x1x128xf32> to vector<1x128xf32>
    %94 = vector.broadcast %93 : vector<1x128xf32> to vector<16x128xf32>
    %95 = arith.addf %91, %94 : vector<16x128xf32>
    %c0_33 = arith.constant 0 : index
    %c0_34 = arith.constant 0 : index
    %c0_35 = arith.constant 0 : index
    %96 = vector.load %arg9[%c0_33, %c0_34, %c0_35] : memref<1x1x128xf32, #tpu.memory_space<vmem>>, vector<1x1x128xf32>
    %97 = vector.shape_cast %96 : vector<1x1x128xf32> to vector<1x128xf32>
    %c0_36 = arith.constant 0 : index
    %c0_37 = arith.constant 0 : index
    %c0_38 = arith.constant 0 : index
    %98 = vector.load %arg10[%c0_36, %c0_37, %c0_38] : memref<1x1x128xf32, #tpu.memory_space<vmem>>, vector<1x1x128xf32>
    %99 = vector.shape_cast %98 : vector<1x1x128xf32> to vector<1x128xf32>
    %cst_39 = arith.constant dense<0.000000e+00> : vector<16xf32>
    %100 = vector.multi_reduction <add>, %95, %cst_39 [1] : vector<16x128xf32> to vector<16xf32>
    %101 = vector.shape_cast %100 : vector<16xf32> to vector<16x1xf32>
    %cst_40 = arith.constant 1.280000e+02 : f32
    %102 = vector.broadcast %cst_40 : f32 to vector<16x1xf32>
    %103 = arith.divf %101, %102 : vector<16x1xf32>
    %104 = vector.broadcast %103 : vector<16x1xf32> to vector<16x128xf32>
    %105 = arith.subf %95, %104 : vector<16x128xf32>
    %106 = arith.mulf %105, %105 : vector<16x128xf32>
    %cst_41 = arith.constant dense<0.000000e+00> : vector<16xf32>
    %107 = vector.multi_reduction <add>, %106, %cst_41 [1] : vector<16x128xf32> to vector<16xf32>
    %108 = vector.shape_cast %107 : vector<16xf32> to vector<16x1xf32>
    %cst_42 = arith.constant 1.280000e+02 : f32
    %109 = vector.broadcast %cst_42 : f32 to vector<16x1xf32>
    %110 = arith.divf %108, %109 : vector<16x1xf32>
    %111 = vector.broadcast %103 : vector<16x1xf32> to vector<16x128xf32>
    %112 = arith.subf %95, %111 : vector<16x128xf32>
    %cst_43 = arith.constant 9.99999974E-6 : f32
    %113 = vector.broadcast %cst_43 : f32 to vector<16x1xf32>
    %114 = arith.addf %110, %113 : vector<16x1xf32>
    %115 = math.rsqrt %114 : vector<16x1xf32>
    %116 = vector.broadcast %115 : vector<16x1xf32> to vector<16x128xf32>
    %117 = arith.mulf %112, %116 : vector<16x128xf32>
    %118 = vector.broadcast %97 : vector<1x128xf32> to vector<16x128xf32>
    %119 = arith.mulf %117, %118 : vector<16x128xf32>
    %120 = vector.broadcast %99 : vector<1x128xf32> to vector<16x128xf32>
    %121 = arith.addf %119, %120 : vector<16x128xf32>
    %122 = arith.truncf %121 : vector<16x128xf32> to vector<16x128xbf16>
    %c0_44 = arith.constant 0 : index
    %c0_45 = arith.constant 0 : index
    %c0_46 = arith.constant 0 : index
    %123 = vector.load %arg11[%c0_44, %c0_45, %c0_46] : memref<1x128x512xbf16, #tpu.memory_space<vmem>>, vector<1x128x512xbf16>
    %124 = vector.shape_cast %123 : vector<1x128x512xbf16> to vector<128x512xbf16>
    %cst_47 = arith.constant dense<0.000000e+00> : vector<16x512xf32>
    %125 = tpu.matmul %122, %124, %cst_47 {dimension_numbers = #tpu.dot_dimension_numbers<[1], [0], [0], [1], [0, 0, 1, 1], [], []>} : vector<16x128xbf16>, vector<128x512xbf16>, vector<16x512xf32> -> vector<16x512xf32>
    %c0_48 = arith.constant 0 : index
    %c0_49 = arith.constant 0 : index
    %c0_50 = arith.constant 0 : index
    %126 = vector.load %arg12[%c0_48, %c0_49, %c0_50] : memref<1x1x512xf32, #tpu.memory_space<vmem>>, vector<1x1x512xf32>
    %127 = vector.shape_cast %126 : vector<1x1x512xf32> to vector<1x512xf32>
    %128 = vector.broadcast %127 : vector<1x512xf32> to vector<16x512xf32>
    %129 = arith.addf %125, %128 : vector<16x512xf32>
    %cst_51 = arith.constant 1.702000e+00 : f32
    %130 = vector.broadcast %cst_51 : f32 to vector<16x512xf32>
    %131 = arith.mulf %130, %129 : vector<16x512xf32>
    %132 = arith.negf %131 : vector<16x512xf32>
    %133 = math.exp %132 : vector<16x512xf32>
    %cst_52 = arith.constant 1.000000e+00 : f32
    %134 = vector.broadcast %cst_52 : f32 to vector<16x512xf32>
    %135 = arith.addf %134, %133 : vector<16x512xf32>
    %136 = arith.divf %134, %135 : vector<16x512xf32>
    %137 = arith.mulf %129, %136 : vector<16x512xf32>
    %138 = arith.truncf %137 : vector<16x512xf32> to vector<16x512xbf16>
    %c0_53 = arith.constant 0 : index
    %c0_54 = arith.constant 0 : index
    %c0_55 = arith.constant 0 : index
    %139 = vector.load %arg13[%c0_53, %c0_54, %c0_55] : memref<1x512x128xbf16, #tpu.memory_space<vmem>>, vector<1x512x128xbf16>
    %140 = vector.shape_cast %139 : vector<1x512x128xbf16> to vector<512x128xbf16>
    %cst_56 = arith.constant dense<0.000000e+00> : vector<16x128xf32>
    %141 = tpu.matmul %138, %140, %cst_56 {dimension_numbers = #tpu.dot_dimension_numbers<[1], [0], [0], [1], [0, 0, 1, 1], [], []>} : vector<16x512xbf16>, vector<512x128xbf16>, vector<16x128xf32> -> vector<16x128xf32>
    %c0_57 = arith.constant 0 : index
    %c0_58 = arith.constant 0 : index
    %c0_59 = arith.constant 0 : index
    %142 = vector.load %arg14[%c0_57, %c0_58, %c0_59] : memref<1x1x128xf32, #tpu.memory_space<vmem>>, vector<1x1x128xf32>
    %143 = vector.shape_cast %142 : vector<1x1x128xf32> to vector<1x128xf32>
    %144 = vector.broadcast %143 : vector<1x128xf32> to vector<16x128xf32>
    %145 = arith.addf %141, %144 : vector<16x128xf32>
    %146 = arith.addf %95, %145 : vector<16x128xf32>
    %c0_60 = arith.constant 0 : index
    %c0_61 = arith.constant 0 : index
    %147 = vector.load %arg19[%c0_60, %c0_61] : memref<16x128xf32, #tpu.memory_space<vmem>>, vector<16x128xf32>
    tpu.vector_store %arg19[%c0_60, %c0_61], %146 {strides = array<i32>} : memref<16x128xf32, #tpu.memory_space<vmem>>, vector<16x128xf32>,
    %c1_i32 = arith.constant 1 : i32
    %148 = arith.cmpi eq, %arg0, %c1_i32 : i32
    %149 = arith.extui %148 : i1 to i32
    %c0_i32_62 = arith.constant 0 : i32
    %150 = arith.cmpi ne, %149, %c0_i32_62 : i32
    scf.if %150 {
      %c0_63 = arith.constant 0 : index
      %c0_64 = arith.constant 0 : index
      %151 = vector.load %arg2[%c0_63, %c0_64] : memref<8x16xf32, #tpu.memory_space<vmem>>, vector<8x16xf32>
      %cst_65 = arith.constant dense<0.000000e+00> : vector<8x128xf32>
      %152 = tpu.matmul %151, %146, %cst_65 {dimension_numbers = #tpu.dot_dimension_numbers<[1], [0], [0], [1], [0, 0, 1, 1], [], []>} : vector<8x16xf32>, vector<16x128xf32>, vector<8x128xf32> -> vector<8x128xf32>
      %c0_66 = arith.constant 0 : index
      %c0_67 = arith.constant 0 : index
      %153 = vector.load %arg15[%c0_66, %c0_67] : memref<1x128xf32, #tpu.memory_space<vmem>>, vector<1x128xf32>
      %c0_68 = arith.constant 0 : index
      %c0_69 = arith.constant 0 : index
      %154 = vector.load %arg16[%c0_68, %c0_69] : memref<1x128xf32, #tpu.memory_space<vmem>>, vector<1x128xf32>
      %cst_70 = arith.constant dense<0.000000e+00> : vector<8xf32>
      %155 = vector.multi_reduction <add>, %152, %cst_70 [1] : vector<8x128xf32> to vector<8xf32>
      %156 = vector.shape_cast %155 : vector<8xf32> to vector<8x1xf32>
      %cst_71 = arith.constant 1.280000e+02 : f32
      %157 = vector.broadcast %cst_71 : f32 to vector<8x1xf32>
      %158 = arith.divf %156, %157 : vector<8x1xf32>
      %159 = vector.broadcast %158 : vector<8x1xf32> to vector<8x128xf32>
      %160 = arith.subf %152, %159 : vector<8x128xf32>
      %161 = arith.mulf %160, %160 : vector<8x128xf32>
      %cst_72 = arith.constant dense<0.000000e+00> : vector<8xf32>
      %162 = vector.multi_reduction <add>, %161, %cst_72 [1] : vector<8x128xf32> to vector<8xf32>
      %163 = vector.shape_cast %162 : vector<8xf32> to vector<8x1xf32>
      %cst_73 = arith.constant 1.280000e+02 : f32
      %164 = vector.broadcast %cst_73 : f32 to vector<8x1xf32>
      %165 = arith.divf %163, %164 : vector<8x1xf32>
      %166 = vector.broadcast %158 : vector<8x1xf32> to vector<8x128xf32>
      %167 = arith.subf %152, %166 : vector<8x128xf32>
      %cst_74 = arith.constant 9.99999974E-6 : f32
      %168 = vector.broadcast %cst_74 : f32 to vector<8x1xf32>
      %169 = arith.addf %165, %168 : vector<8x1xf32>
      %170 = math.rsqrt %169 : vector<8x1xf32>
      %171 = vector.broadcast %170 : vector<8x1xf32> to vector<8x128xf32>
      %172 = arith.mulf %167, %171 : vector<8x128xf32>
      %173 = vector.broadcast %153 : vector<1x128xf32> to vector<8x128xf32>
      %174 = arith.mulf %172, %173 : vector<8x128xf32>
      %175 = vector.broadcast %154 : vector<1x128xf32> to vector<8x128xf32>
      %176 = arith.addf %174, %175 : vector<8x128xf32>
      %177 = arith.truncf %176 : vector<8x128xf32> to vector<8x128xbf16>
      %c0_75 = arith.constant 0 : index
      %c0_76 = arith.constant 0 : index
      %178 = vector.load %arg17[%c0_75, %c0_76] : memref<128x128xbf16, #tpu.memory_space<vmem>>, vector<128x128xbf16>
      %cst_77 = arith.constant dense<0.000000e+00> : vector<8x128xf32>
      %179 = tpu.matmul %177, %178, %cst_77 {dimension_numbers = #tpu.dot_dimension_numbers<[1], [0], [0], [1], [0, 0, 1, 1], [], []>} : vector<8x128xbf16>, vector<128x128xbf16>, vector<8x128xf32> -> vector<8x128xf32>
      %c0_78 = arith.constant 0 : index
      %c0_79 = arith.constant 0 : index
      %180 = vector.load %arg18[%c0_78, %c0_79] : memref<8x128xf32, #tpu.memory_space<vmem>>, vector<8x128xf32>
      tpu.vector_store %arg18[%c0_78, %c0_79], %179 {strides = array<i32>} : memref<8x128xf32, #tpu.memory_space<vmem>>, vector<8x128xf32>,
    } else {
    }
    return
  }
  func.func @transform_0(%arg0: i32) -> (i32, i32) {
    %c0_i32 = arith.constant 0 : i32
    %c0_i32_0 = arith.constant 0 : i32
    %c0_i32_1 = arith.constant 0 : i32
    return %c0_i32, %c0_i32_0 : i32, i32
  }
  func.func @transform_1(%arg0: i32) -> (i32, i32) {
    %c0_i32 = arith.constant 0 : i32
    %c0_i32_0 = arith.constant 0 : i32
    %c0_i32_1 = arith.constant 0 : i32
    return %c0_i32, %c0_i32_0 : i32, i32
  }
  func.func @transform_2(%arg0: i32) -> (i32, i32, i32) {
    %c0_i32 = arith.constant 0 : i32
    %c0_i32_0 = arith.constant 0 : i32
    %c0_i32_1 = arith.constant 0 : i32
    return %arg0, %c0_i32, %c0_i32_0 : i32, i32, i32
  }
  func.func @transform_3(%arg0: i32) -> (i32, i32, i32) {
    %c0_i32 = arith.constant 0 : i32
    %c0_i32_0 = arith.constant 0 : i32
    %c0_i32_1 = arith.constant 0 : i32
    return %arg0, %c0_i32, %c0_i32_0 : i32, i32, i32
  }
  func.func @transform_4(%arg0: i32) -> (i32, i32, i32) {
    %c0_i32 = arith.constant 0 : i32
    %c0_i32_0 = arith.constant 0 : i32
    %c0_i32_1 = arith.constant 0 : i32
    return %arg0, %c0_i32, %c0_i32_0 : i32, i32, i32
  }
  func.func @transform_5(%arg0: i32) -> (i32, i32, i32) {
    %c0_i32 = arith.constant 0 : i32
    %c0_i32_0 = arith.constant 0 : i32
    %c0_i32_1 = arith.constant 0 : i32
    return %arg0, %c0_i32, %c0_i32_0 : i32, i32, i32
  }
  func.func @transform_6(%arg0: i32) -> (i32, i32, i32) {
    %c0_i32 = arith.constant 0 : i32
    %c0_i32_0 = arith.constant 0 : i32
    %c0_i32_1 = arith.constant 0 : i32
    return %arg0, %c0_i32, %c0_i32_0 : i32, i32, i32
  }
  func.func @transform_7(%arg0: i32) -> (i32, i32, i32) {
    %c0_i32 = arith.constant 0 : i32
    %c0_i32_0 = arith.constant 0 : i32
    %c0_i32_1 = arith.constant 0 : i32
    return %arg0, %c0_i32, %c0_i32_0 : i32, i32, i32
  }
  func.func @transform_8(%arg0: i32) -> (i32, i32, i32) {
    %c0_i32 = arith.constant 0 : i32
    %c0_i32_0 = arith.constant 0 : i32
    %c0_i32_1 = arith.constant 0 : i32
    return %arg0, %c0_i32, %c0_i32_0 : i32, i32, i32
  }
  func.func @transform_9(%arg0: i32) -> (i32, i32, i32) {
    %c0_i32 = arith.constant 0 : i32
    %c0_i32_0 = arith.constant 0 : i32
    %c0_i32_1 = arith.constant 0 : i32
    return %arg0, %c0_i32, %c0_i32_0 : i32, i32, i32
  }
  func.func @transform_10(%arg0: i32) -> (i32, i32, i32) {
    %c0_i32 = arith.constant 0 : i32
    %c0_i32_0 = arith.constant 0 : i32
    %c0_i32_1 = arith.constant 0 : i32
    return %arg0, %c0_i32, %c0_i32_0 : i32, i32, i32
  }
  func.func @transform_11(%arg0: i32) -> (i32, i32, i32) {
    %c0_i32 = arith.constant 0 : i32
    %c0_i32_0 = arith.constant 0 : i32
    %c0_i32_1 = arith.constant 0 : i32
    return %arg0, %c0_i32, %c0_i32_0 : i32, i32, i32
  }
  func.func @transform_12(%arg0: i32) -> (i32, i32, i32) {
    %c0_i32 = arith.constant 0 : i32
    %c0_i32_0 = arith.constant 0 : i32
    %c0_i32_1 = arith.constant 0 : i32
    return %arg0, %c0_i32, %c0_i32_0 : i32, i32, i32
  }
  func.func @transform_13(%arg0: i32) -> (i32, i32, i32) {
    %c0_i32 = arith.constant 0 : i32
    %c0_i32_0 = arith.constant 0 : i32
    %c0_i32_1 = arith.constant 0 : i32
    return %arg0, %c0_i32, %c0_i32_0 : i32, i32, i32
  }
  func.func @transform_14(%arg0: i32) -> (i32, i32) {
    %c0_i32 = arith.constant 0 : i32
    %c0_i32_0 = arith.constant 0 : i32
    %c0_i32_1 = arith.constant 0 : i32
    return %c0_i32, %c0_i32_0 : i32, i32
  }
  func.func @transform_15(%arg0: i32) -> (i32, i32) {
    %c0_i32 = arith.constant 0 : i32
    %c0_i32_0 = arith.constant 0 : i32
    %c0_i32_1 = arith.constant 0 : i32
    return %c0_i32, %c0_i32_0 : i32, i32
  }
  func.func @transform_16(%arg0: i32) -> (i32, i32) {
    %c0_i32 = arith.constant 0 : i32
    %c0_i32_0 = arith.constant 0 : i32
    %c0_i32_1 = arith.constant 0 : i32
    return %c0_i32, %c0_i32_0 : i32, i32
  }
  func.func @transform_17(%arg0: i32) -> (i32, i32) {
    %c0_i32 = arith.constant 0 : i32
    %c0_i32_0 = arith.constant 0 : i32
    %c0_i32_1 = arith.constant 0 : i32
    return %c0_i32, %c0_i32_0 : i32, i32
  }
}

</mosaic_0001>

<bundles_post_ra>
// kernel: text_encoder_forward.1
= control target key start
LH: loop header
LB: loop body
LE: loop exit
PB: predicated region body
PF: predicated region fallthrough
CT: control target
= control target key end

     0   :  { %s4888_s0 = inlined_call_operand.vmem [shape: f32[16,128], index: 0, kind: input, shape index: {}]   ;;  %s4889_s1 = inlined_call_operand.vmem [shape: f32[8,16], index: 1, kind: input, shape index: {}]   ;;  %s4890_s2 = inlined_call_operand.vmem [shape: f32[2,1,128], index: 2, kind: input, shape index: {}]   ;;  %s4891_s3 = inlined_call_operand.vmem [shape: f32[2,1,128], index: 3, kind: input, shape index: {}]   ;;  %s4892_s4 = inlined_call_operand.hbm [shape: bf16[2,128,384], index: 4, kind: input, shape index: {}]   ;;  %s4893_s5 = inlined_call_operand.vmem [shape: f32[2,1,384], index: 5, kind: input, shape index: {}]   ;;  %s4894_s6 = inlined_call_operand.vmem [shape: bf16[2,128,128], index: 6, kind: input, shape index: {}]   ;;  %s4895_s7 = inlined_call_operand.vmem [shape: f32[2,1,128], index: 7, kind: input, shape index: {}]   ;;  %s4896_s8 = inlined_call_operand.vmem [shape: f32[2,1,128], index: 8, kind: input, shape index: {}]   ;;  %s4897_s9 = inlined_call_operand.vmem [shape: f32[2,1,128], index: 9, kind: input, shape index: {}]   ;;  %s4898_s10 = inlined_call_operand.hbm [shape: bf16[2,128,512], index: 10, kind: input, shape index: {}]   ;;  %s4899_s11 = inlined_call_operand.vmem [shape: f32[2,1,512], index: 11, kind: input, shape index: {}]   ;;  %s4900_s12 = inlined_call_operand.hbm [shape: bf16[2,512,128], index: 12, kind: input, shape index: {}]   ;;  %s4901_s13 = inlined_call_operand.vmem [shape: f32[2,1,128], index: 13, kind: input, shape index: {}]   ;;  %s4902_s14 = inlined_call_operand.vmem [shape: f32[1,128], index: 14, kind: input, shape index: {}]   ;;  %s4903_s15 = inlined_call_operand.vmem [shape: f32[1,128], index: 15, kind: input, shape index: {}]   ;;  %s4904_s16 = inlined_call_operand.vmem [shape: bf16[128,128], index: 16, kind: input, shape index: {}]   ;;  %s4905_s17 = inlined_call_operand.vmem [shape: f32[8,128], index: 17, kind: output, shape index: {}]  }
   0x1   :  { %4914 = sst [smem:[#allocation14_spill]] %s4888_s0 }
   0x2   :  { %4915 = sst [smem:[#allocation15_spill]] %s4889_s1 }
   0x3   :  { %4916 = sst [smem:[#allocation16_spill]] %s4892_s4 }
   0x4   :  { %4917 = sst [smem:[#allocation17_spill]] %s4894_s6 }
   0x5   :  { %4918 = sst [smem:[#allocation18_spill]] %s4898_s10 }
   0x6   :  { %4919 = sst [smem:[#allocation19_spill]] %s4900_s12 }
   0x7   :  { %4920 = sst [smem:[#allocation20_spill]] %s4901_s13 }
   0x8   :  { %4921 = sst [smem:[#allocation21_spill]] %s4902_s14 }
   0x9   :  { %4922 = sst [smem:[#allocation22_spill]] %s4903_s15 }
   0xa   :  { %4923 = sst [smem:[#allocation23_spill]] %s4904_s16 }
   0xb   :  { %4924 = sst [smem:[#allocation24_spill]] %s4905_s17 }
   0xc   :  { %22 = vsyncpa [#allocation5], 0 }
   0xd   :  { %24 = vsyncpa [#allocation5 + $0x1], 0 }
   0xe   :  { %25 = vsyncpa [#allocation7], 0 }
   0xf   :  { %27 = vsyncpa [#allocation7 + $0x1], 0  ;;  %s4225_s24 = smov 0   ;;  %s4227_s25 = smov 0  }
  0x10   :  { %s4229_s26 = smov 0   ;;  %s4231_s27 = smov 0  }
  0x11 LB: > { %4925 = sst [smem:[#allocation11_spill]] %s4110_s26  ;;  %s4244_s28 = sadd.s32 4294967295, %s4114_s27   ;;  %s4114_s27 = sphi %s4231_s27, %s4953_s27   ;;  %s4110_s26 = sphi %s4229_s26, %s4955_s26   ;;  %s4106_s25 = sphi %s4227_s25, %s4957_s25   ;;  %s4102_s24 = sphi %s4225_s24, %s4956_s24  }
  0x12   : > { %s4247_s29 = sadd.s32 1, %s4114_s27   ;;  %s134_s30 = sadd.s32 1, %s4110_s26 }
  0x13   : > { %4926 = sst [smem:[#allocation12_spill]] %s4247_s29  ;;  %s131_s0 = ssub.s32 %s4114_s27, %s4247_s29 }
  0x14   : > { %p132_p0 = scmp.eq.s32.totalorder %s131_s0, 0  ;;  %p141_p1 = scmp.ne.s32.totalorder %s4110_s26, %s4106_s25 }
  0x15   : > { %p142_p2 = scmp.eq.s32.totalorder %s4114_s27, 0  ;;  %p147_p3 = scmp.ne.s32.totalorder %s4106_s25, %s4102_s24 }
  0x16   : > { %s4257_s18 = scalar_select %p132_p0, %s4110_s26, %s134_s30  }
  0x17   : > { %p143_p4 = por %p142_p2, %p141_p1  ;;  %p148_p5 = scmp.eq.s32.totalorder %s4244_s28, 0 }
  0x18   : > { %4927 = sst [smem:[#allocation13_spill]] %s4257_s18  ;;  %p3718_p6 = scmp.lt.s32.totalorder %s4114_s27, 2 }
  0x19   : > { %p4261_p7 = por %p148_p5, %p147_p3  ;;  %s4266_s1 = sand.u32 1, %s4110_s26  }
  0x1a   : > { %p4268_p8 = pnand %p3718_p6, %p143_p4  ;;  %s570_s21 = sand.u32 1, %s4114_s27  }
  0x1b   : > { %s4928_s19 = scalar_select %p4261_p7, 1, 0 }
  0x1c   : > { %s4910_s22 = sshll.u32 %s4266_s1, 8  ;;  %s4911_s23 = sshll.u32 %s4114_s27, 12 }
  0x1d   : > { %s574_s24 = scalar_lea.vmem [#allocation6], %s4910_s22  ;;  %s4930_s10 = sld [smem:[#allocation18_spill]] }
  0x1e   : > { %s581_s0 = sshll.u32 %s574_s24, 4  ;;  %s4286_s26 = scalar_lea.sflag [#allocation7], %s570_s21  ;;  %s4284_s0 = int_to_ptr.vmem [resolvable:$true] %s581_s0 }
  0x1f   : > { %p4292_p10 = pneg %p4268_p8 }
  0x23   : > { %s4282_s29 = scalar_lea.hbm %s4930_s10, %s4911_s23  ;;  %s3991_s30 = scalar_lea.hbm %s4930_s10, 8192 }
  0x24   : > { %s3986_s17 = scalar_lea.hbm %s4282_s29, 4096  ;;  %p3992_p13 = scmp.lt.u32.totalorder %s4282_s29, %s4930_s10 }
  0x25   : > { %p3987_p9 = scmp.ne.s32.totalorder %s4282_s29, %s3986_s17  ;;  %p3993_p0 = scmp.lt.u32.totalorder %s3991_s30, %s3986_s17 }
  0x26   : > { %p3995_p2 = scmp.lt.u32.totalorder %s3986_s17, %s4282_s29 }
  0x27   : > { %p3989_p11 = pnand %p4292_p10, %p3987_p9  ;;  %p3994_p1 = por %p3993_p0, %p3992_p13 }
  0x29   : > { %p3990_p12 = pneg %p3989_p11  ;;  %p3996_p3 = por %p3995_p2, %p3994_p1 }
  0x2b   : > { %p3997_p4 = pnand %p3996_p3, %p3990_p12 }
  0x2d   : > { %4000 = shalt.err (!%p3997_p4)
}
  0x2e   : > { %s4001_s21 = scalar_lea.vmem %s4284_s0, 4096  ;;  %s4116_s18 = smov [#allocation6]  }
  0x2f   : > { %p4002_p5 = scmp.ne.s32.totalorder %s4284_s0, %s4001_s21  ;;  %s4006_s24 = sshll.u32 %s4116_s18, 4  ;;  %s4007_s24 = int_to_ptr.vmem [resolvable:$false] %s4006_s24 }
  0x30   : > { %s4008_s15 = scalar_lea.vmem %s4007_s24, 8192  ;;  %p4009_p11 = scmp.lt.s32.totalorder %s4284_s0, %s4007_s24 }
  0x31   : > { %p4004_p6 = pnand %p4002_p5, %p4292_p10  ;;  %p4010_p7 = scmp.lt.s32.totalorder %s4008_s15, %s4001_s21 }
  0x33   : > { %p4005_p9 = pneg %p4004_p6  ;;  %p4011_p13 = por %p4010_p7, %p4009_p11 }
  0x35   : > { %p4012_p0 = pnand %p4011_p13, %p4005_p9 }
  0x37   : > { %4015 = shalt.err (!%p4012_p0)
}
  0x38   : > { %s4117_s17 = smov 256   ;;  %s4118_s23 = smov 16  }
  0x39   : > { %3714 = dma.hbm_to_vmem [thread:$0]  (!%p4268_p8), %s4282_s29, 4096, %s4284_s0, %s4286_s26, %s4117_s17, %s4117_s17, %s4118_s23  }
  0x3a   : > { %s4932_s30 = sshll.u32 %s4114_s27, 12  ;;  %s4933_s12 = sld [smem:[#allocation19_spill]] }
  0x3b   : > { %s4934_s15 = sshll.u32 %s4266_s1, 8  ;;  %p3276_p7 = scmp.ge.s32.totalorder %s4114_s27, 1 }
  0x3c   : > { %s602_s10 = scalar_lea.vmem [#allocation8], %s4934_s15  ;;  %p623_p12 = scmp.lt.s32.totalorder %s4114_s27, 3 }
  0x3d   : > { %s609_s14 = sshll.u32 %s602_s10, 4  ;;  %s3698_s16 = smul.u32 192, %s4266_s1  ;;  %s4326_s14 = int_to_ptr.vmem [resolvable:$true] %s609_s14 }
  0x3e   : > { %p4330_p1 = pnand %p3276_p7, %p623_p12  ;;  %s3699_s29 = smul.u32 3072, %s4114_s27 }
  0x3f   : > { %s4936_s4 = sld [smem:[#allocation16_spill]]  ;;  %s520_s10 = scalar_lea.vmem [#allocation4], %s3698_s16 }
  0x40   : > { %s4321_s24 = scalar_lea.hbm %s4933_s12, %s4932_s30  ;;  %s527_s30 = sshll.u32 %s520_s10, 4  ;;  %s4340_s30 = int_to_ptr.vmem [resolvable:$true] %s527_s30 }
  0x41   : > { %s4935_s13 = scalar_select %p4330_p1, 1, 0 }
  0x42   : > { %s517_s21 = scalar_lea.sflag [#allocation5], %s4266_s1 }
  0x45   : > { %s4338_s23 = scalar_lea.hbm %s4936_s4, %s3699_s29  ;;  %s4021_s0 = scalar_lea.hbm %s4936_s4, 6144 }
  0x46   : > { %s4016_s18 = scalar_lea.hbm %s4338_s23, 3072  ;;  %p4022_p5 = scmp.lt.u32.totalorder %s4338_s23, %s4936_s4 }
  0x47   : > { %p4017_p2 = scmp.ne.s32.totalorder %s4338_s23, %s4016_s18  ;;  %p4023_p6 = scmp.lt.u32.totalorder %s4021_s0, %s4016_s18 }
  0x48   : > { %p4025_p11 = scmp.lt.u32.totalorder %s4016_s18, %s4338_s23 }
  0x49   : > { %p4019_p3 = pnand %p4017_p2, %p4292_p10  ;;  %p4024_p9 = por %p4023_p6, %p4022_p5 }
  0x4b   : > { %p4020_p4 = pneg %p4019_p3  ;;  %p4026_p13 = por %p4025_p11, %p4024_p9 }
  0x4d   : > { %p4027_p0 = pnand %p4026_p13, %p4020_p4 }
  0x4f   : > { %4030 = shalt.err (!%p4027_p0)
}
  0x50   : > { %s4031_s16 = scalar_lea.vmem %s4340_s30, 3072  ;;  %s4119_s10 = smov [#allocation4]  }
  0x51   : > { %p4032_p7 = scmp.ne.s32.totalorder %s4340_s30, %s4031_s16  ;;  %s4036_s27 = sshll.u32 %s4119_s10, 4  ;;  %s4037_s27 = int_to_ptr.vmem [resolvable:$false] %s4036_s27 }
  0x52   : > { %s4038_s15 = scalar_lea.vmem %s4037_s27, 6144  ;;  %p4039_p3 = scmp.lt.s32.totalorder %s4340_s30, %s4037_s27 }
  0x53   : > { %p4034_p12 = pnand %p4032_p7, %p4292_p10  ;;  %p4040_p1 = scmp.lt.s32.totalorder %s4038_s15, %s4031_s16 }
  0x55   : > { %p4035_p2 = pneg %p4034_p12  ;;  %p4041_p5 = por %p4040_p1, %p4039_p3 }
  0x57   : > { %p4042_p6 = pnand %p4041_p5, %p4035_p2 }
  0x59   : > { %4045 = shalt.err (!%p4042_p6)
}
  0x5a   : > { %s4120_s18 = smov 192   ;;  %s4121_s0 = smov 12  }
  0x5b   : > { %3711 = dma.hbm_to_vmem [thread:$0]  (!%p4268_p8), %s4338_s23, 3072, %s4340_s30, %s517_s21, %s4120_s18, %s4120_s18, %s4121_s0  }
  0x5c   : > { %s4046_s29 = scalar_lea.hbm %s4321_s24, 4096  ;;  %s4051_s10 = scalar_lea.hbm %s4933_s12, 8192 }
  0x5d   : > { %p4047_p4 = scmp.ne.s32.totalorder %s4321_s24, %s4046_s29  ;;  %p4052_p11 = scmp.lt.u32.totalorder %s4321_s24, %s4933_s12 }
  0x5e   : > { %p4053_p13 = scmp.lt.u32.totalorder %s4051_s10, %s4046_s29  ;;  %p4055_p7 = scmp.lt.u32.totalorder %s4046_s29, %s4321_s24 }
  0x5f   : > { %p4049_p1 = pnand %p4047_p4, %p4292_p10 }
  0x60   : > { %p4054_p0 = por %p4053_p13, %p4052_p11 }
  0x61   : > { %p4050_p9 = pneg %p4049_p1 }
  0x62   : > { %p4056_p12 = por %p4055_p7, %p4054_p0 }
  0x64   : > { %p4057_p2 = pnand %p4056_p12, %p4050_p9 }
  0x66   : > { %4060 = shalt.err (!%p4057_p2)
}
  0x67   : > { %s4061_s1 = scalar_lea.vmem %s4326_s14, 4096  ;;  %s4122_s23 = smov [#allocation8]  }
  0x68   : > { %p4062_p3 = scmp.ne.s32.totalorder %s4326_s14, %s4061_s1  ;;  %s4066_s30 = sshll.u32 %s4122_s23, 4  ;;  %s4067_s30 = int_to_ptr.vmem [resolvable:$false] %s4066_s30 }
  0x69   : > { %s4068_s21 = scalar_lea.vmem %s4067_s30, 8192  ;;  %p4069_p4 = scmp.lt.s32.totalorder %s4326_s14, %s4067_s30 }
  0x6a   : > { %p4064_p5 = pnand %p4062_p3, %p4292_p10  ;;  %p4070_p1 = scmp.lt.s32.totalorder %s4068_s21, %s4061_s1 }
  0x6c   : > { %p4065_p6 = pneg %p4064_p5  ;;  %p4071_p11 = por %p4070_p1, %p4069_p4 }
  0x6e   : > { %p4072_p13 = pnand %p4071_p11, %p4065_p6 }
  0x70   : > { %4075 = shalt.err (!%p4072_p13)
}
  0x71   : > { %s4123_s18 = smov 64   ;;  %s4124_s0 = smov 4  }
  0x72   : > { %3717 = dma.hbm_to_vmem [thread:$0]  (!%p4268_p8), %s4321_s24, 4096, %s4326_s14, %s4286_s26, %s4123_s18, %s4123_s18, %s4124_s0  }
  0x73   : > { %p4937_p10 = scmp.ne.s32.totalorder %s4935_s13, 0 }
  0x74   : > { %s629_s22 = sand.u32 (!%p4937_p10), 1, %s4106_s25   ;;  %p4938_p9 = scmp.ne.s32.totalorder (!%p4937_p10), %s4928_s19, 0 }
  0x75   : > { %627 = sbr.rel (%p4937_p10) target bundleno = 3484 (0xd9c), region = 88  ;;  %s630_s17 = scalar_lea.sflag (!%p4937_p10), [#allocation5], %s629_s22 }
  0x76   : > { %s3700_s29 = smul.u32 (!%p4937_p10), 192, %s629_s22 }
  0x78   : > { %s4391_s16 = scalar_lea.vmem (!%p4937_p10), [#allocation4], %s3700_s29 }
  0x7c   : > { %4093 = dma.done.wait (%p4938_p9), %s630_s17, 3072  }
  0x7d   : > { %4095 = vsyncadd (%p4938_p9), %s630_s17, 4294964224  ;;  %s638_s10 = sand.u32 1, %s4244_s28   ;;  %s3277_s20 = sshll.u32 %s629_s22, 8 }
  0x7e   : > { %s639_s14 = scalar_lea.sflag [#allocation7], %s638_s10  ;;  %s4398_s26 = scalar_lea.vmem [#allocation6], %s3277_s20 }
  0x7f   : > { %4097 = dma.done.wait (%p4938_p9), %s639_s14, 8192  }
  0x80   : > { %4099 = vsyncadd (%p4938_p9), %s639_s14, 4294959104  ;;  %p738_p8 = scmp.lt.s32.totalorder %s4244_s28, 1  ;;  %s4939_s6 = sld [smem:[#allocation17_spill]] }
  0x81   : > { %s4940_s10 = sld [smem:[#allocation20_spill]]  ;;  %p3282_p0 = scmp.ne.s32.totalorder %s4244_s28, 0 }
  0x82   : > { %s4406_s13 = scalar_select %p738_p8, %s4244_s28, 1 }
  0x83   : > { %773 = sbr.rel (%p3282_p0) target bundleno = 140 (0x8c), region = 104  ;;  %s4941_s24 = sld [smem:[#allocation14_spill]] (!%p3282_p0)  ;;  %v778_v2 = vlaneseq (!%p3282_p0)  ;;  %vm784_vm0 = vcmask (!%p3282_p0), 64512   ;;  %v4125_v5 = vmov (!%p3282_p0), -1e+09  }
  0x84   : > { %s3701_s30 = smul.u32 3, %s4406_s13  ;;  %s3425_s21 = sshll.u32 %s4406_s13, 6 }
  0x85   : > { %s761_s12 = scalar_lea.vmem %s4897_s9, %s4406_s13  ;;  %s3281_s18 = sshll.u32 %s4406_s13, 2  ;;  %v779_v3 = vshrl.u32 (!%p3282_p0), %v778_v2, 7  ;;  %v781_v4 = vand.u32 (!%p3282_p0), 127, %v778_v2 }
  0x86   : > { %s4421_s22 = scalar_lea.vmem %s4939_s6, %s3425_s21  ;;  %s4430_s27 = scalar_lea.vmem %s4893_s5, %s3701_s30 }
  0x87   : > { %s4444_s6 = scalar_lea.vmem %s4899_s11, %s3281_s18  ;;  %s768_s14 = scalar_lea.vmem %s4940_s10, %s4406_s13  ;;  %vm782_vm1 = vcmp.le.s32.totalorder (!%p3282_p0), %v781_v4, %v779_v3 }
  0x88   : > { %s4450_s30 = scalar_lea.vmem [#allocation8], %s3277_s20  ;;  %v783_v6 = vsel (!%p3282_p0), %vm782_vm1, 0.0, %v4125_v5 }
  0x89   : > { %s4942_s19 = smov (!%p3282_p0), %s4941_s24  ;;  %v774_v0 = vld [vmem:[%s4941_s24] sm:$0xff] (!%p3282_p0)  ;;  %785 = vst.msk [vmem:[#allocation3] sm:$0xff] (!%p3282_p0), %vm784_vm0, %v783_v6 }
  0x8a   : > { %v775_v1 = vld [vmem:[%s4942_s19 + $0x8] sm:$0xff]  ;;  %776 = vst [vmem:[#allocation2] sm:$0xff] %v774_v0 }
  0x8b   : > { %777 = vst [vmem:[#allocation2 + $0x8] sm:$0xff] %v775_v1 }
  0x8c PF: > { %v3782_v9 = vld [vmem:[%s4391_s16 + $0x4] ss:$12 sps:$4 sm:$0xff]   ;;  %v3784_v10 = vld [vmem:[%s4391_s16] ss:$12 sps:$4 sm:$0xff]   ;;  %v4126_v11 = vmov 0.0   ;;  %v4127_v37 = vmov 0   ;;  %s4943_s10 = scalar_lea.vmem %s4890_s2, %s4406_s13  ;;  %s4944_s0 = scalar_lea.vmem %s4891_s3, %s4406_s13  ;;  %v864_v60 = vlaneseq }
  0x8d   : > { %3532 = vmatprep.subr.bf16.mxu1 %v4126_v11  ;;  %v3785_v12 = vld [vmem:[%s4391_s16 + $0x8] ss:$12 sps:$4 sm:$0xff]   ;;  %1007 = vmatprep.subr.bf16.mxu0 %v3782_v9  ;;  %v3788_v22 = vld [vmem:[%s4391_s16 + $0x18] ss:$12 sps:$4 sm:$0xff]   ;;  %v3789_v23 = vld [vmem:[%s4391_s16 + $0x20] ss:$12 sps:$4 sm:$0xff]   ;;  %s4945_s15 = scalar_lea.vmem %s4895_s7, %s4406_s13  ;;  %s4946_s23 = scalar_lea.vmem %s4896_s8, %s4406_s13 }
  0x8e   : > { %v3786_v13 = vld [vmem:[%s4391_s16 + $0x1c] ss:$12 sps:$4 sm:$0xff]   ;;  %1008 = vmatpush1.bf16.msra.mxu0 %v3784_v10  ;;  %3533 = vmatpush3.bf16.msra.mxu1 %v3785_v12  ;;  %v3790_v24 = vld [vmem:[%s4391_s16 + $0x34] ss:$12 sps:$4 sm:$0xff]   ;;  %v3793_v26 = vld [vmem:[%s4391_s16 + $0x38] ss:$12 sps:$4 sm:$0xff]  }
  0x8f   : > { %1009 = vmatprep.subr.bf16.mxu0 %v3786_v13  ;;  %3534 = vmatprep.subr.bf16.mxu1 %v4126_v11  ;;  %v3792_v25 = vld [vmem:[%s4391_s16 + $0x30] ss:$12 sps:$4 sm:$0xff]   ;;  %v3794_v27 = vld [vmem:[%s4391_s16 + $0x4c] ss:$12 sps:$4 sm:$0xff]   ;;  %v3796_v28 = vld [vmem:[%s4391_s16 + $0x48] ss:$12 sps:$4 sm:$0xff]  }
  0x90   : > { %v3797_v29 = vld [vmem:[%s4391_s16 + $0x50] ss:$12 sps:$4 sm:$0xff]   ;;  %v3800_v31 = vld [vmem:[%s4391_s16 + $0x60] ss:$12 sps:$4 sm:$0xff]   ;;  %v3801_v32 = vld [vmem:[%s4391_s16 + $0x68] ss:$12 sps:$4 sm:$0xff]   ;;  %1039 = vmatprep.mubr.bf16.mxu0 %v4127_v37 }
  0x91   : > { %v3798_v30 = vld [vmem:[%s4391_s16 + $0x64] ss:$12 sps:$4 sm:$0xff]   ;;  %v3802_v33 = vld [vmem:[%s4391_s16 + $0x7c] ss:$12 sps:$4 sm:$0xff]   ;;  %v3805_v35 = vld [vmem:[%s4391_s16 + $0x80] ss:$12 sps:$4 sm:$0xff]  }
  0x92   : > { %v787_v8 = vld [vmem:[#allocation2 + $0x8] sm:$0xff]  ;;  %1010 = vmatpush1.bf16.msra.mxu0 %v3788_v22  ;;  %3535 = vmatpush3.bf16.msra.mxu1 %v3789_v23  ;;  %v3804_v34 = vld [vmem:[%s4391_s16 + $0x78] ss:$12 sps:$4 sm:$0xff]   ;;  %vm4128_vm2 = vmmov 0   ;;  %v3283_v51 = vld [vmem:[%s4943_s10] ss:$0 sm:$0xff] }
  0x93   : > { %v786_v7 = vld [vmem:[#allocation2] sm:$0xff]  ;;  %3536 = vmatprep.subr.bf16.mxu1 %v4126_v11  ;;  %1011 = vmatprep.subr.bf16.mxu0 %v3790_v24  ;;  %v3806_v36 = vld [vmem:[%s4391_s16 + $0x94] ss:$12 sps:$4 sm:$0xff]   ;;  %v3808_v38 = vld [vmem:[%s4391_s16 + $0x90] ss:$12 sps:$4 sm:$0xff]   ;;  %v4520_v61 = vshrl.u32 %v864_v60, 7 }
  0x94   : > { %790 = vadd.xlane.f32.xlu0 %v786_v7  ;;  %3548 = vmatprep.mubr.msk.bf16.mxu1 %vm4128_vm2, %v4126_v11  ;;  %v3809_v39 = vld [vmem:[%s4391_s16 + $0x98] ss:$12 sps:$4 sm:$0xff]   ;;  %v3812_v41 = vld [vmem:[%s4391_s16 + $0xa8] ss:$12 sps:$4 sm:$0xff]   ;;  %v3813_v42 = vld [vmem:[%s4391_s16 + $0xb0] ss:$12 sps:$4 sm:$0xff]  }
  0x95   : > { %v3810_v40 = vld [vmem:[%s4391_s16 + $0xac] ss:$12 sps:$4 sm:$0xff]   ;;  %v3284_v55 = vld [vmem:[%s4944_s0] ss:$0 sm:$0xff]  ;;  %v866_v62 = vsub.s32 0, %v4520_v61  ;;  %v870_v0 = vsub.s32 1, %v4520_v61 }
  0x96   : > { %1012 = vmatpush1.bf16.msra.mxu0 %v3792_v25  ;;  %3537 = vmatpush3.bf16.msra.mxu1 %v3793_v26  ;;  %v862_v63 = vld [vmem:[%s4430_s27] sm:$0x7]  ;;  %vm1140_vm3 = vcmask 261120   ;;  %s4129_s27 = smov 96   ;;  %s4130_s29 = smov 64   ;;  %vm1609_vm4 = vcmask 1043456  }
  0x97   : > { %3538 = vmatprep.subr.bf16.mxu1 %v4126_v11  ;;  %1013 = vmatprep.subr.bf16.mxu0 %v3794_v27  ;;  %v867_v1 = vrot.slane %v862_v63, %v866_v62  ;;  %v871_v2 = vrot.slane %v862_v63, %v870_v0  ;;  %s4131_s17 = smov 32   ;;  %v874_v27 = vsub.s32 2, %v4520_v61  ;;  %vm1509_vm5 = vcmask 64512   ;;  %p3409_p7 = scmp.ne.s32.totalorder %s4244_s28, 1 }
  0x98   : > { %792 = vadd.xlane.f32.xlu0 %v787_v8  ;;  %vm2001_vm6 = vcmask 523264   ;;  %vm2004_vm7 = vcmask 785408   ;;  %vm4133_vm8 = vmmov (!%p3409_p7), 0   ;;  %s4948_s20 = sld [smem:[#allocation15_spill]] (!%p3409_p7)  ;;  %vm2887_vm9 = vcmask (!%p3409_p7), 130048   ;;  %s4950_s13 = sld [smem:[#allocation21_spill]] (!%p3409_p7) }
  0x99   : > { %s4949_s18 = sld [smem:[#allocation23_spill]] (!%p3409_p7)  ;;  %s4951_s28 = sld [smem:[#allocation22_spill]] (!%p3409_p7) }
  0x9a   : > { %1014 = vmatpush1.bf16.msra.mxu0 %v3796_v28  ;;  %3539 = vmatpush3.bf16.msra.mxu1 %v3797_v29  ;;  %s4952_s0 = sld [smem:[#allocation24_spill]] (!%p3409_p7) }
  0x9b   : > { %3540 = vmatprep.subr.bf16.mxu1 %v4126_v11  ;;  %1015 = vmatprep.subr.bf16.mxu0 %v3798_v30 }
  0x9e   : > { %1016 = vmatpush1.bf16.msra.mxu0 %v3800_v31  ;;  %3541 = vmatpush3.bf16.msra.mxu1 %v3801_v32  ;;  %v875_v31 = vrot.slane %v862_v63, %v874_v27 }
  0x9f   : > { %1017 = vmatprep.subr.bf16.mxu0 %v3802_v33  ;;  %3542 = vmatprep.subr.bf16.mxu1 %v4126_v11 }
  0xa2   : > { %1018 = vmatpush1.bf16.msra.mxu0 %v3804_v34  ;;  %3543 = vmatpush3.bf16.msra.mxu1 %v3805_v35 }
  0xa3   : > { %1019 = vmatprep.subr.bf16.mxu0 %v3806_v36  ;;  %3544 = vmatprep.subr.bf16.mxu1 %v4126_v11 }
  0xa6   : > { %1020 = vmatpush1.bf16.msra.mxu0 %v3808_v38  ;;  %3545 = vmatpush3.bf16.msra.mxu1 %v3809_v39 }
  0xa7   : > { %1021 = vmatprep.subr.bf16.mxu0 %v3810_v40  ;;  %3546 = vmatprep.subr.bf16.mxu1 %v4126_v11 }
  0xaa   : > { %1022 = vmatpush1.bf16.msra.mxu0 %v3812_v41  ;;  %3547 = vmatpush3.bf16.msra.mxu1 %v3813_v42 }
  0xab   : > { %3552 = vmatprep.subr.bf16.mxu1 %v4126_v11  ;;  %3576 = vmatprep.subr.bf16.mxu0 %v4126_v11 }
 0x121   : > { %v791_v14 = vpop.xlane.xlu0 %790 }
 0x122   : > { %v795_v15 = vmul.f32 0.0078125, %v791_v14 }
 0x124   : > { %v4465_v16 = vsub.f32 %v786_v7, %v795_v15 }
 0x125   : > { %v793_v17 = vpop.xlane.xlu0 %792 }
 0x126   : > { %v796_v18 = vmul.f32 0.0078125, %v793_v17  ;;  %v799_v19 = vmul.f32 %v4465_v16, %v4465_v16 }
 0x128   : > { %v4469_v20 = vsub.f32 %v787_v8, %v796_v18  ;;  %801 = vadd.xlane.f32.xlu1 %v799_v19 }
 0x12a   : > { %v800_v21 = vmul.f32 %v4469_v20, %v4469_v20 }
 0x12c   : > { %803 = vadd.xlane.f32.xlu1 %v800_v21 }
 0x1b5   : > { %v802_v43 = vpop.xlane.xlu1 %801 }
 0x1b6   : > { %v805_v44 = vmul.f32 0.0078125, %v802_v43 }
 0x1b8   : > { %v807_v45 = vadd.f32 1e-05, %v805_v44 }
 0x1b9   : > { %v804_v46 = vpop.xlane.xlu1 %803 }
 0x1ba   : > { %3902 = vrsqrt.f32 %v807_v45  ;;  %v806_v47 = vmul.f32 0.0078125, %v804_v46 }
 0x1bc   : > { %v808_v48 = vadd.f32 1e-05, %v806_v47 }
 0x1be   : > { %3904 = vrsqrt.f32 %v808_v48 }
 0x1c4   : > { %v3903_v49 = vpop.eup %3902 }
 0x1c5   : > { %v811_v50 = vmul.f32 %v3903_v49, %v4465_v16  ;;  %v1139_v49 = vld [vmem:[#allocation3] sm:$0xff] }
 0x1c7   : > { %v819_v54 = vmul.f32 %v3283_v51, %v811_v50 }
 0x1c8   : > { %v3905_v52 = vpop.eup %3904 }
 0x1c9   : > { %v812_v53 = vmul.f32 %v3905_v52, %v4469_v20  ;;  %v827_v57 = vadd.f32 %v3284_v55, %v819_v54 }
 0x1cb   : > { %v820_v56 = vmul.f32 %v3283_v51, %v812_v53 }
 0x1cd   : > { %v828_v58 = vadd.f32 %v3284_v55, %v820_v56 }
 0x1cf   : > { %v829_v59 = vpack.c.bf16 %v828_v58, %v827_v57 }
 0x1d1   : > { %1040 = vmatmul.mubr.bf16.vlgmr.msra.gmra.mrb[0].mxu0 %v829_v59  ;;  %3549 = vmatmul.mubr.bf16.vlgmr.msra.gmra.mrb[0].mxu1 %v829_v59 }
 0x1d2   : > { %3554 = vmatprep.mubr.msk.bf16.mxu1 %vm4128_vm2, %v4126_v11  ;;  %3578 = vmatprep.mubr.msk.bf16.mxu0 %vm4128_vm2, %v4126_v11 }
 0x2a4   : > { %v1041_v3 = vpop.f32.mrb[0].mxu0  ;;  %v1084_v4 = vpop.f32.mrb[0].mxu1 }
 0x2a5   : > { %v1042_v5 = vadd.f32 %v1041_v3, %v867_v1  ;;  %v1043_v6 = vpop.f32.mrb[1].mxu0  ;;  %v3550_v7 = vpop.f32.mrb[1].mxu1  ;;  %v1085_v35 = vadd.f32 %v1084_v4, %v875_v31 }
 0x2a6   : > { %v1044_v8 = vadd.f32 %v1043_v6, %v871_v2  ;;  %v1045_v9 = vpop.f32.mrb[2].mxu0  ;;  %v4529_v10 = vpop.f32.mrb[2].mxu1 }
 0x2a7   : > { %v1091_v12 = vpack.c.bf16 %v1042_v5, %v1042_v5  ;;  %v1047_v13 = vpop.f32.mrb[3].mxu0  ;;  %v3551_v14 = vpop.f32.mrb[3].mxu1  ;;  %v1046_v19 = vadd.f32 %v1045_v9, %v867_v1  ;;  %v4570_v39 = vpack.c.bf16 %v1085_v35, %v1085_v35  ;;  %v1088_v44 = vadd.f32 %v4529_v10, %v875_v31 }
 0x2a8   : > { %v1093_v15 = vpack.c.bf16 %v1044_v8, %v1044_v8  ;;  %v1048_v16 = vadd.f32 %v1047_v13, %v871_v2 }
 0x2a9   : > { %1099 = vrot.lane.b32.xlu1 %v1091_v12, %s4129_s27  ;;  %v1092_v20 = vpack.c.bf16 %v1046_v19, %v1046_v19  ;;  %v1611_v42 = vsel %vm1609_vm4, %v4570_v39, 0  ;;  %v4589_v46 = vpack.c.bf16 %v1088_v44, %v1088_v44 }
 0x2aa   : > { %v1094_v17 = vpack.c.bf16 %v1048_v16, %v1048_v16  ;;  %1113 = vrot.lane.b32.xlu0 %v1093_v15, %s4129_s27  ;;  %v1145_v18 = vsel %vm1140_vm3, %v1093_v15, 0 }
 0x2ab   : > { %3553 = vmatpush3.bf16.xpose.msra.mxu1 %v1145_v18  ;;  %v1657_v48 = vsel %vm1609_vm4, %v4589_v46, 0 }
 0x2ac   : > { %3558 = vmatprep.subr.bf16.mxu1 %v4126_v11  ;;  %v1191_v21 = vsel %vm1140_vm3, %v1094_v17, 0 }
 0x2ad   : > { %1115 = vrot.lane.b32.xlu1 %v1094_v17, %s4129_s27 }
 0x2ae   : > { %1117 = vrot.lane.b32.xlu0 %v1093_v15, %s4130_s29 }
 0x2b1   : > { %1101 = vrot.lane.b32.xlu1 %v1092_v20, %s4129_s27 }
 0x2b2   : > { %1103 = vrot.lane.b32.xlu0 %v1091_v12, %s4130_s29  ;;  %3555 = vmatmul.mubr.msk.bf16.vlgmr.msra.gmra.mrb[4].mxu1 %vm1140_vm3, %v1091_v12 }
 0x2b3   : > { %3559 = vmatpush3.bf16.xpose.msra.mxu1 %v1191_v21  ;;  %3560 = vmatprep.mubr.msk.bf16.mxu1 %vm4128_vm2, %v4126_v11 }
 0x2b4   : > { %3564 = vmatprep.subr.bf16.mxu1 %v4126_v11 }
 0x2b5   : > { %1119 = vrot.lane.b32.xlu1 %v1094_v17, %s4130_s29 }
 0x2b6   : > { %1121 = vrot.lane.b32.xlu0 %v1093_v15, %s4131_s17 }
 0x2b9   : > { %1105 = vrot.lane.b32.xlu1 %v1092_v20, %s4130_s29 }
 0x2ba   : > { %1107 = vrot.lane.b32.xlu0 %v1091_v12, %s4131_s17  ;;  %3561 = vmatmul.mubr.msk.bf16.vlgmr.msra.gmra.mrb[8].mxu1 %vm1140_vm3, %v1092_v20 }
 0x2bb   : > { %3566 = vmatprep.mubr.msk.bf16.mxu1 %vm4128_vm2, %v4126_v11 }
 0x2bd   : > { %1123 = vrot.lane.b32.xlu1 %v1094_v17, %s4131_s17 }
 0x2c1   : > { %1109 = vrot.lane.b32.xlu1 %v1092_v20, %s4131_s17 }
 0x31b   : > { %v1100_v22 = vpop.permute.xlu1 %1099 }
 0x31c   : > { %v1114_v23 = vpop.permute.xlu0 %1113 }
 0x31d   : > { %v1237_v24 = vsel %vm1140_vm3, %v1114_v23, 0 }
 0x31e   : > { %3565 = vmatpush3.bf16.xpose.msra.mxu1 %v1237_v24 }
 0x31f   : > { %v1116_v25 = vpop.permute.xlu1 %1115  ;;  %3570 = vmatprep.subr.bf16.mxu1 %v4126_v11 }
 0x320   : > { %v1118_v26 = vpop.permute.xlu0 %1117  ;;  %v1283_v32 = vsel %vm1140_vm3, %v1116_v25, 0 }
 0x321   : > { %v1329_v28 = vsel %vm1140_vm3, %v1118_v26, 0 }
 0x322   : > { %3577 = vmatpush3.bf16.xpose.msra.mxu0 %v1329_v28 }
 0x323   : > { %v1102_v29 = vpop.permute.xlu1 %1101  ;;  %3588 = vmatprep.subr.bf16.mxu0 %v4126_v11 }
 0x324   : > { %v1104_v30 = vpop.permute.xlu0 %1103 }
 0x325   : > { %3567 = vmatmul.mubr.msk.bf16.vlgmr.msra.gmra.mrb[12].mxu1 %vm1140_vm3, %v1100_v22 }
 0x326   : > { %3571 = vmatpush3.bf16.xpose.msra.mxu1 %v1283_v32  ;;  %3572 = vmatprep.mubr.msk.bf16.mxu1 %vm4128_vm2, %v4126_v11 }
 0x327   : > { %v1120_v33 = vpop.permute.xlu1 %1119  ;;  %3582 = vmatprep.subr.bf16.mxu1 %v4126_v11 }
 0x328   : > { %v1122_v34 = vpop.permute.xlu0 %1121  ;;  %v1375_v40 = vsel %vm1140_vm3, %v1120_v33, 0 }
 0x329   : > { %v1421_v36 = vsel %vm1140_vm3, %v1122_v34, 0  ;;  %3579 = vmatmul.mubr.msk.bf16.vlgmr.msra.gmra.mrb[4].mxu0 %vm1140_vm3, %v1104_v30 }
 0x32a   : > { %3589 = vmatpush3.bf16.xpose.msra.mxu0 %v1421_v36  ;;  %3590 = vmatprep.mubr.msk.bf16.mxu0 %vm4128_vm2, %v4126_v11 }
 0x32b   : > { %3600 = vmatprep.subr.bf16.mxu0 %v4126_v11  ;;  %v1106_v38 = vpop.permute.xlu1 %1105 }
 0x32c   : > { %v1108_v41 = vpop.permute.xlu0 %1107 }
 0x32d   : > { %3573 = vmatmul.mubr.msk.bf16.vlgmr.msra.gmra.mrb[16].mxu1 %vm1140_vm3, %v1102_v29 }
 0x32e   : > { %3583 = vmatpush3.bf16.xpose.msra.mxu1 %v1375_v40  ;;  %3584 = vmatprep.mubr.msk.bf16.mxu1 %vm4128_vm2, %v4126_v11 }
 0x32f   : > { %3594 = vmatprep.subr.bf16.mxu1 %v4126_v11  ;;  %v1124_v43 = vpop.permute.xlu1 %1123 }
 0x330   : > { %v1467_v45 = vsel %vm1140_vm3, %v1124_v43, 0 }
 0x331   : > { %3591 = vmatmul.mubr.msk.bf16.vlgmr.msra.gmra.mrb[8].mxu0 %vm1140_vm3, %v1108_v41 }
 0x332   : > { %3601 = vmatpush3.bf16.msra.mxu0 %v1611_v42  ;;  %3602 = vmatprep.mubr.msk.bf16.mxu0 %vm4128_vm2, %v4126_v11 }
 0x333   : > { %3612 = vmatprep.subr.bf16.mxu0 %v4126_v11  ;;  %v1110_v47 = vpop.permute.xlu1 %1109 }
 0x335   : > { %3585 = vmatmul.mubr.msk.bf16.vlgmr.msra.gmra.mrb[20].mxu1 %vm1140_vm3, %v1106_v38 }
 0x336   : > { %3595 = vmatpush3.bf16.xpose.msra.mxu1 %v1467_v45  ;;  %3596 = vmatprep.mubr.msk.bf16.mxu1 %vm4128_vm2, %v4126_v11 }
 0x337   : > { %3606 = vmatprep.subr.bf16.mxu1 %v4126_v11 }
 0x33d   : > { %3597 = vmatmul.mubr.msk.bf16.vlgmr.msra.gmra.mrb[24].mxu1 %vm1140_vm3, %v1110_v47 }
 0x33e   : > { %3607 = vmatpush3.bf16.msra.mxu1 %v1657_v48  ;;  %3608 = vmatprep.mubr.msk.bf16.mxu1 %vm4128_vm2, %v4126_v11 }
 0x33f   : > { %3618 = vmatprep.subr.bf16.mxu1 %v4126_v11 }
 0x385   : > { %v1181_v50 = vpop.f32.mrb[4].mxu1 }
 0x386   : > { %v1182_v51 = vadd.f32 %v1181_v50, %v1139_v49  ;;  %v3556_v52 = vpop.f32.mrb[5].mxu1 }
 0x387   : > { %v1184_v53 = vpop.f32.mrb[6].mxu1 }
 0x388   : > { %v3557_v54 = vpop.f32.mrb[7].mxu1  ;;  %v1510_v55 = vsel %vm1509_vm5, %v1182_v51, -inf }
 0x389   : > { %1511 = vmax.xlane.f32.xlu0 %v1510_v55 }
 0x38d   : > { %v1227_v56 = vpop.f32.mrb[8].mxu1 }
 0x38e   : > { %v1228_v57 = vadd.f32 %v1227_v56, %v1139_v49  ;;  %v3562_v58 = vpop.f32.mrb[9].mxu1 }
 0x38f   : > { %v1230_v59 = vpop.f32.mrb[10].mxu1 }
 0x390   : > { %v3563_v60 = vpop.f32.mrb[11].mxu1  ;;  %v1513_v63 = vsel %vm1509_vm5, %v1228_v57, -inf }
 0x391   : > { %1514 = vmax.xlane.f32.xlu1 %v1513_v63 }
 0x3f8   : > { %v1273_v1 = vpop.f32.mrb[12].mxu1 }
 0x3f9   : > { %v1274_v2 = vadd.f32 %v1273_v1, %v1139_v49  ;;  %v3568_v3 = vpop.f32.mrb[13].mxu1 }
 0x3fa   : > { %v1276_v4 = vpop.f32.mrb[14].mxu1 }
 0x3fb   : > { %v3569_v5 = vpop.f32.mrb[15].mxu1  ;;  %v1516_v6 = vsel %vm1509_vm5, %v1274_v2, -inf }
 0x3fc   : > { %v1365_v7 = vpop.f32.mrb[4].mxu0  ;;  %1517 = vmax.xlane.f32.xlu0 %v1516_v6 }
 0x3fd   : > { %v3580_v8 = vpop.f32.mrb[5].mxu0  ;;  %v4600_v16 = vadd.f32 %v1365_v7, %v1139_v49 }
 0x3fe   : > { %v1368_v9 = vpop.f32.mrb[6].mxu0 }
 0x3ff   : > { %v3581_v10 = vpop.f32.mrb[7].mxu0  ;;  %v1522_v24 = vsel %vm1509_vm5, %v4600_v16, -inf }
 0x400   : > { %v1319_v12 = vpop.f32.mrb[16].mxu1 }
 0x401   : > { %v1320_v13 = vadd.f32 %v1319_v12, %v1139_v49  ;;  %v3574_v14 = vpop.f32.mrb[17].mxu1 }
 0x402   : > { %v1322_v15 = vpop.f32.mrb[18].mxu1 }
 0x403   : > { %v3575_v17 = vpop.f32.mrb[19].mxu1  ;;  %v1519_v18 = vsel %vm1509_vm5, %v1320_v13, -inf }
 0x404   : > { %v1457_v19 = vpop.f32.mrb[8].mxu0  ;;  %1520 = vmax.xlane.f32.xlu0 %v1519_v18 }
 0x405   : > { %v3592_v20 = vpop.f32.mrb[9].mxu0  ;;  %v4603_v22 = vadd.f32 %v1457_v19, %v1139_v49 }
 0x406   : > { %v1460_v21 = vpop.f32.mrb[10].mxu0 }
 0x407   : > { %v3593_v23 = vpop.f32.mrb[11].mxu0  ;;  %v1528_v31 = vsel %vm1509_vm5, %v4603_v22, -inf }
 0x408   : > { %1523 = vmax.xlane.f32.xlu0 %v1522_v24  ;;  %v1411_v25 = vpop.f32.mrb[20].mxu1 }
 0x409   : > { %v1412_v26 = vadd.f32 %v1411_v25, %v1139_v49  ;;  %v3586_v28 = vpop.f32.mrb[21].mxu1 }
 0x40a   : > { %v1414_v29 = vpop.f32.mrb[22].mxu1 }
 0x40b   : > { %v3587_v30 = vpop.f32.mrb[23].mxu1  ;;  %v1525_v32 = vsel %vm1509_vm5, %v1412_v26, -inf }
 0x40c   : > { %1529 = vmax.xlane.f32.xlu0 %v1528_v31  ;;  %1526 = vmax.xlane.f32.xlu1 %v1525_v32 }
 0x410   : > { %v1503_v33 = vpop.f32.mrb[24].mxu1 }
 0x411   : > { %v1504_v34 = vadd.f32 %v1503_v33, %v1139_v49  ;;  %v3598_v35 = vpop.f32.mrb[25].mxu1 }
 0x412   : > { %v1506_v36 = vpop.f32.mrb[26].mxu1 }
 0x413   : > { %v3599_v38 = vpop.f32.mrb[27].mxu1  ;;  %v1531_v40 = vsel %vm1509_vm5, %v1504_v34, -inf }
 0x414   : > { %1532 = vmax.xlane.f32.xlu1 %v1531_v40 }
 0x416   : > { %v1512_v41 = vpop.xlane.xlu0 %1511 }
 0x417   : > { %v1534_v42 = vsub.f32 %v1182_v51, %v1512_v41 }
 0x419   : > { %v1542_v43 = vmul.f32 1.442695, %v1534_v42 }
 0x41b   : > { %3906 = vpow2.f32 %v1542_v43 }
 0x41e   : > { %v1515_v44 = vpop.xlane.xlu1 %1514 }
 0x41f   : > { %v1535_v45 = vsub.f32 %v1228_v57, %v1515_v44 }
 0x421   : > { %v1544_v47 = vmul.f32 1.442695, %v1535_v45 }
 0x423   : > { %3908 = vpow2.f32 %v1544_v47 }
 0x425   : > { %v3907_v48 = vpop.eup %3906 }
 0x426   : > { %v1558_v50 = vsel %vm1509_vm5, %v3907_v48, 0.0 }
 0x427   : > { %1559 = vadd.xlane.f32.xlu0 %v1558_v50 }
 0x42d   : > { %v3909_v52 = vpop.eup %3908 }
 0x42e   : > { %v1561_v49 = vsel %vm1509_vm5, %v3909_v52, 0.0 }
 0x42f   : > { %1562 = vadd.xlane.f32.xlu1 %v1561_v49 }
 0x440   : > { %1129 = vrot.lane.b32.xlu1 %v4589_v46, %s4129_s27 }
 0x444   : > { %1131 = vrot.lane.b32.xlu1 %v4570_v39, %s4130_s29 }
 0x448   : > { %1133 = vrot.lane.b32.xlu1 %v4589_v46, %s4130_s29 }
 0x489   : > { %v1518_v51 = vpop.xlane.xlu0 %1517 }
 0x48a   : > { %v1536_v53 = vsub.f32 %v1274_v2, %v1518_v51 }
 0x48c   : > { %v1546_v54 = vmul.f32 1.442695, %v1536_v53 }
 0x48e   : > { %3910 = vpow2.f32 %v1546_v54 }
 0x491   : > { %v1521_v55 = vpop.xlane.xlu0 %1520 }
 0x492   : > { %v1537_v56 = vsub.f32 %v1320_v13, %v1521_v55 }
 0x494   : > { %v1548_v57 = vmul.f32 1.442695, %v1537_v56 }
 0x495   : > { %v1524_v8 = vpop.xlane.xlu0 %1523 }
 0x496   : > { %3912 = vpow2.f32 %v1548_v57  ;;  %v1538_v15 = vsub.f32 %v4600_v16, %v1524_v8 }
 0x498   : > { %v4619_v58 = vpop.eup %3910  ;;  %v1550_v18 = vmul.f32 1.442695, %v1538_v15 }
 0x499   : > { %v1527_v59 = vpop.xlane.xlu1 %1526  ;;  %v1564_v60 = vsel %vm1509_vm5, %v4619_v58, 0.0  ;;  %v1530_v12 = vpop.xlane.xlu0 %1529 }
 0x49a   : > { %v1539_v63 = vsub.f32 %v1412_v26, %v1527_v59  ;;  %1565 = vadd.xlane.f32.xlu0 %v1564_v60  ;;  %v1540_v19 = vsub.f32 %v4603_v22, %v1530_v12 }
 0x49c   : > { %v1552_v1 = vmul.f32 1.442695, %v1539_v63  ;;  %v1554_v23 = vmul.f32 1.442695, %v1540_v19 }
 0x49e   : > { %3914 = vpow2.f32 %v1552_v1 }
 0x4a0   : > { %v4623_v3 = vpop.eup %3912 }
 0x4a1   : > { %v1533_v4 = vpop.xlane.xlu1 %1532  ;;  %v1567_v2 = vsel %vm1509_vm5, %v4623_v3, 0.0 }
 0x4a2   : > { %v1541_v5 = vsub.f32 %v1504_v34, %v1533_v4  ;;  %1568 = vadd.xlane.f32.xlu1 %v1567_v2 }
 0x4a4   : > { %v1556_v6 = vmul.f32 1.442695, %v1541_v5 }
 0x4a6   : > { %3916 = vpow2.f32 %v1556_v6 }
 0x4a8   : > { %v4627_v7 = vpop.eup %3914 }
 0x4a9   : > { %v1573_v9 = vsel %vm1509_vm5, %v4627_v7, 0.0 }
 0x4aa   : > { %1574 = vadd.xlane.f32.xlu1 %v1573_v9 }
 0x4b0   : > { %v4631_v10 = vpop.eup %3916  ;;  %1127 = vrot.lane.b32.xlu0 %v4570_v39, %s4129_s27 }
 0x4b1   : > { %v1579_v13 = vsel %vm1509_vm5, %v4631_v10, 0.0 }
 0x4b2   : > { %1580 = vadd.xlane.f32.xlu1 %v1579_v13 }
 0x4b4   : > { %v1560_v14 = vpop.xlane.xlu0 %1559 }
 0x4b5   : > { %3918 = vrcp.f32 %v1560_v14 }
 0x4bc   : > { %v1563_v17 = vpop.xlane.xlu1 %1562 }
 0x4bd   : > { %3920 = vrcp.f32 %v1563_v17 }
 0x4be   : > { %3922 = vpow2.f32 %v1550_v18  ;;  %v3814_v18 = vld [vmem:[%s4421_s22] sm:$0xff]  }
 0x4bf   : > { %v3919_v20 = vpop.eup %3918  ;;  %3924 = vpow2.f32 %v1554_v23 }
 0x4c0   : > { %v1590_v21 = vmul.f32 %v3919_v20, %v3907_v48  ;;  %v1130_v26 = vpop.permute.xlu1 %1129 }
 0x4c1   : > { %v1749_v29 = vsel %vm1609_vm4, %v1130_v26, 0 }
 0x4c2   : > { %v1598_v24 = vpack.c.bf16 %v1590_v21, %v1590_v21  ;;  %v3815_v21 = vld [vmem:[%s4421_s22 + $0x8] sm:$0xff]  }
 0x4c3   : > { %1137 = vrot.lane.b32.xlu1 %v4589_v46, %s4131_s17 }
 0x4c4   : > { %3603 = vmatmul.mubr.msk.bf16.vlgmr.msra.gmra.mrb[12].mxu0 %vm1509_vm5, %v1598_v24  ;;  %v1132_v32 = vpop.permute.xlu1 %1131  ;;  %v3816_v24 = vld [vmem:[%s4421_s22 + $0x10] sm:$0xff]  }
 0x4c5   : > { %3614 = vmatprep.mubr.msk.bf16.mxu0 %vm4128_vm2, %v4126_v11  ;;  %v1795_v43 = vsel %vm1609_vm4, %v1132_v32, 0 }
 0x4c7   : > { %v3921_v16 = vpop.eup %3920 }
 0x4c8   : > { %v1591_v25 = vmul.f32 %v3921_v16, %v3909_v52  ;;  %v3923_v22 = vpop.eup %3922  ;;  %v1134_v34 = vpop.permute.xlu1 %1133 }
 0x4c9   : > { %v1570_v46 = vsel %vm1509_vm5, %v3923_v22, 0.0  ;;  %v3925_v30 = vpop.eup %3924  ;;  %v1841_v48 = vsel %vm1609_vm4, %v1134_v34, 0 }
 0x4ca   : > { %v1599_v28 = vpack.c.bf16 %v1591_v25, %v1591_v25  ;;  %v1576_v31 = vsel %vm1509_vm5, %v3925_v30, 0.0 }
 0x4cc   : > { %3609 = vmatmul.mubr.msk.bf16.vlgmr.msra.gmra.mrb[28].mxu1 %vm1509_vm5, %v1599_v28 }
 0x4cd   : > { %3619 = vmatpush3.bf16.msra.mxu1 %v1749_v29  ;;  %3620 = vmatprep.mubr.msk.bf16.mxu1 %vm4128_vm2, %v4126_v11 }
 0x4ce   : > { %3630 = vmatprep.subr.bf16.mxu1 %v4126_v11 }
 0x4cf   : > { %1571 = vadd.xlane.f32.xlu0 %v1570_v46  ;;  %v3818_v46 = vld [vmem:[%s4421_s22 + $0x20] sm:$0xff]  }
 0x4d3   : > { %1577 = vadd.xlane.f32.xlu0 %v1576_v31 }
 0x4e9   : > { %1135 = vrot.lane.b32.xlu0 %v4570_v39, %s4131_s17 }
 0x527   : > { %v1566_v33 = vpop.xlane.xlu0 %1565 }
 0x528   : > { %3926 = vrcp.f32 %v1566_v33 }
 0x52b   : > { %v1128_v35 = vpop.permute.xlu0 %1127 }
 0x52c   : > { %v1703_v36 = vsel %vm1609_vm4, %v1128_v35, 0 }
 0x52d   : > { %3613 = vmatpush3.bf16.msra.mxu0 %v1703_v36 }
 0x52e   : > { %3624 = vmatprep.subr.bf16.mxu0 %v4126_v11 }
 0x52f   : > { %v1569_v38 = vpop.xlane.xlu1 %1568 }
 0x530   : > { %3928 = vrcp.f32 %v1569_v38 }
 0x532   : > { %v3927_v40 = vpop.eup %3926 }
 0x533   : > { %v1592_v41 = vmul.f32 %v3927_v40, %v4619_v58  ;;  %v3819_v40 = vld [vmem:[%s4421_s22 + $0x28] sm:$0xff]  }
 0x535   : > { %v1600_v42 = vpack.c.bf16 %v1592_v41, %v1592_v41  ;;  %v3820_v41 = vld [vmem:[%s4421_s22 + $0x30] sm:$0xff]  }
 0x537   : > { %3615 = vmatmul.mubr.msk.bf16.vlgmr.msra.gmra.mrb[16].mxu0 %vm1509_vm5, %v1600_v42  ;;  %v1575_v39 = vpop.xlane.xlu1 %1574 }
 0x538   : > { %3625 = vmatpush3.bf16.msra.mxu0 %v1795_v43  ;;  %3626 = vmatprep.mubr.msk.bf16.mxu0 %vm4128_vm2, %v4126_v11  ;;  %3930 = vrcp.f32 %v1575_v39  ;;  %v3821_v43 = vld [vmem:[%s4421_s22 + $0x38] sm:$0xff]  }
 0x539   : > { %3636 = vmatprep.subr.bf16.mxu0 %v4126_v11 }
 0x53a   : > { %v3929_v44 = vpop.eup %3928 }
 0x53b   : > { %v1593_v45 = vmul.f32 %v3929_v44, %v4623_v3 }
 0x53d   : > { %v1601_v47 = vpack.c.bf16 %v1593_v45, %v1593_v45 }
 0x53f   : > { %3621 = vmatmul.mubr.msk.bf16.vlgmr.msra.gmra.mrb[32].mxu1 %vm1509_vm5, %v1601_v47  ;;  %v1581_v50 = vpop.xlane.xlu1 %1580 }
 0x540   : > { %3631 = vmatpush3.bf16.msra.mxu1 %v1841_v48  ;;  %3932 = vrcp.f32 %v1581_v50  ;;  %3632 = vmatprep.mubr.msk.bf16.mxu1 %vm4128_vm2, %v4126_v11 }
 0x541   : > { %3642 = vmatprep.subr.bf16.mxu1 %v4126_v11 }
 0x542   : > { %v3931_v52 = vpop.eup %3930 }
 0x543   : > { %v1595_v49 = vmul.f32 %v3931_v52, %v4627_v7  ;;  %v1138_v51 = vpop.permute.xlu1 %1137 }
 0x544   : > { %v1933_v54 = vsel %vm1609_vm4, %v1138_v51, 0 }
 0x545   : > { %v1603_v53 = vpack.c.bf16 %v1595_v49, %v1595_v49 }
 0x547   : > { %3633 = vmatmul.mubr.msk.bf16.vlgmr.msra.gmra.mrb[36].mxu1 %vm1509_vm5, %v1603_v53 }
 0x548   : > { %3643 = vmatpush3.bf16.msra.mxu1 %v1933_v54  ;;  %3644 = vmatprep.mubr.msk.bf16.mxu1 %vm4128_vm2, %v4126_v11 }
 0x54a   : > { %v3933_v55 = vpop.eup %3932 }
 0x54b   : > { %v1597_v56 = vmul.f32 %v3933_v55, %v4631_v10 }
 0x54d   : > { %v1605_v57 = vpack.c.bf16 %v1597_v56, %v1597_v56 }
 0x54f   : > { %3645 = vmatmul.mubr.msk.bf16.vlgmr.msra.gmra.mrb[40].mxu1 %vm1509_vm5, %v1605_v57 }
 0x550   : > { %2411 = vmatprep.mubr.bf16.mxu1 %v4127_v37 }
 0x55c   : > { %v1572_v58 = vpop.xlane.xlu0 %1571 }
 0x55d   : > { %3934 = vrcp.f32 %v1572_v58 }
 0x560   : > { %v1578_v59 = vpop.xlane.xlu0 %1577 }
 0x561   : > { %3936 = vrcp.f32 %v1578_v59 }
 0x564   : > { %v1136_v1 = vpop.permute.xlu0 %1135 }
 0x565   : > { %v1887_v2 = vsel %vm1609_vm4, %v1136_v1, 0 }
 0x567   : > { %v3935_v60 = vpop.eup %3934 }
 0x568   : > { %v1594_v63 = vmul.f32 %v3935_v60, %v3923_v22  ;;  %v3817_v22 = vld [vmem:[%s4421_s22 + $0x18] sm:$0xff]  }
 0x56a   : > { %v1602_v3 = vpack.c.bf16 %v1594_v63, %v1594_v63 }
 0x56b   : > { %v3937_v4 = vpop.eup %3936 }
 0x56c   : > { %3627 = vmatmul.mubr.msk.bf16.vlgmr.msra.gmra.mrb[20].mxu0 %vm1509_vm5, %v1602_v3  ;;  %v1596_v5 = vmul.f32 %v3937_v4, %v3925_v30 }
 0x56d   : > { %3637 = vmatpush3.bf16.msra.mxu0 %v1887_v2  ;;  %3638 = vmatprep.mubr.msk.bf16.mxu0 %vm4128_vm2, %v4126_v11 }
 0x56e   : > { %3648 = vmatprep.subr.bf16.mxu0 %v4126_v11  ;;  %v1604_v6 = vpack.c.bf16 %v1596_v5, %v1596_v5 }
 0x574   : > { %3639 = vmatmul.mubr.msk.bf16.vlgmr.msra.gmra.mrb[24].mxu0 %vm1509_vm5, %v1604_v6 }
 0x575   : > { %3664 = vmatprep.mubr.msk.bf16.mxu0 %vm4128_vm2, %v4126_v11  ;;  %3649 = vmatpush3.bf16.msra.mxu0 %v3814_v18 }
 0x576   : > { %3650 = vmatprep.subr.bf16.mxu0 %v4126_v11 }
 0x579   : > { %3651 = vmatpush3.bf16.msra.mxu0 %v3815_v21  ;;  %v3825_v21 = vld [vmem:[%s4398_s26 + $0x8] ss:$16 sps:$4 sm:$0xff]  }
 0x57a   : > { %3652 = vmatprep.subr.bf16.mxu0 %v4126_v11 }
 0x57d   : > { %3653 = vmatpush3.bf16.msra.mxu0 %v3816_v24  ;;  %v3830_v24 = vld [vmem:[%s4398_s26 + $0x24] ss:$16 sps:$4 sm:$0xff]  }
 0x57e   : > { %3654 = vmatprep.subr.bf16.mxu0 %v4126_v11 }
 0x581   : > { %3655 = vmatpush3.bf16.msra.mxu0 %v3817_v22 }
 0x582   : > { %3656 = vmatprep.subr.bf16.mxu0 %v4126_v11 }
 0x585   : > { %3657 = vmatpush3.bf16.msra.mxu0 %v3818_v46 }
 0x586   : > { %3658 = vmatprep.subr.bf16.mxu0 %v4126_v11 }
 0x589   : > { %3659 = vmatpush3.bf16.msra.mxu0 %v3819_v40  ;;  %v3842_v40 = vld [vmem:[%s4398_s26 + $0x64] ss:$16 sps:$4 sm:$0xff]  }
 0x58a   : > { %3660 = vmatprep.subr.bf16.mxu0 %v4126_v11 }
 0x58d   : > { %3661 = vmatpush3.bf16.msra.mxu0 %v3820_v41  ;;  %v3845_v41 = vld [vmem:[%s4398_s26 + $0x6c] ss:$16 sps:$4 sm:$0xff]  }
 0x58e   : > { %3662 = vmatprep.subr.bf16.mxu0 %v4126_v11 }
 0x591   : > { %3663 = vmatpush3.bf16.msra.mxu0 %v3821_v43  ;;  %v3843_v43 = vld [vmem:[%s4398_s26 + $0x68] ss:$16 sps:$4 sm:$0xff]  }
 0x597   : > { %v4683_v7 = vpop.f32.mrb[12].mxu0 }
 0x598   : > { %v3604_v8 = vpop.f32.mrb[13].mxu0 }
 0x599   : > { %v1650_v9 = vpop.f32.mrb[14].mxu0 }
 0x59a   : > { %v3605_v10 = vpop.f32.mrb[15].mxu0  ;;  %v3974_v9 = vld [vmem:[#allocation2] sm:$0xff] }
 0x59f   : > { %v4685_v12 = vpop.f32.mrb[28].mxu1 }
 0x5a0   : > { %v3610_v13 = vpop.f32.mrb[29].mxu1 }
 0x5a1   : > { %v1696_v14 = vpop.f32.mrb[30].mxu1 }
 0x5a2   : > { %v3611_v15 = vpop.f32.mrb[31].mxu1 }
 0x5a3   : > { %v3975_v15 = vld [vmem:[#allocation2 + $0x8] sm:$0xff] }
 0x60a   : > { %v1739_v17 = vpop.f32.mrb[16].mxu0 }
 0x60b   : > { %v3616_v19 = vpop.f32.mrb[17].mxu0 }
 0x60c   : > { %v1742_v20 = vpop.f32.mrb[18].mxu0  ;;  %v3822_v19 = vld [vmem:[%s4398_s26] ss:$16 sps:$4 sm:$0xff]  }
 0x60d   : > { %v3617_v23 = vpop.f32.mrb[19].mxu0  ;;  %v3824_v20 = vld [vmem:[%s4398_s26 + $0x4] ss:$16 sps:$4 sm:$0xff]  }
 0x60e   : > { %v3827_v23 = vld [vmem:[%s4398_s26 + $0xc] ss:$16 sps:$4 sm:$0xff]   ;;  %2379 = vmatprep.subr.bf16.mxu1 %v3824_v20  ;;  %v3872_v20 = vld [vmem:[%s4450_s30] sm:$0xff]  }
 0x60f   : > { %2422 = vmatprep.subr.bf16.mxu0 %v3827_v23  ;;  %2380 = vmatpush1.bf16.msra.mxu1 %v3822_v19  ;;  %v3871_v19 = vld [vmem:[%s4450_s30 + $0xc0] sm:$0xff]   ;;  %v3874_v23 = vld [vmem:[%s4450_s30 + $0x48] sm:$0xff]  }
 0x610   : > { %2381 = vmatprep.subr.bf16.mxu1 %v3830_v24  ;;  %v3875_v24 = vld [vmem:[%s4450_s30 + $0xc8] sm:$0xff]  }
 0x612   : > { %v1785_v16 = vpop.f32.mrb[32].mxu1 }
 0x613   : > { %v3767_v25 = vpack.i.bf16 %v1785_v16, %v1739_v17  ;;  %v3622_v26 = vpop.f32.mrb[33].mxu1  ;;  %v3833_v16 = vld [vmem:[%s4398_s26 + $0x2c] ss:$16 sps:$4 sm:$0xff]  }
 0x614   : > { %v1788_v28 = vpop.f32.mrb[34].mxu1  ;;  %v3831_v26 = vld [vmem:[%s4398_s26 + $0x28] ss:$16 sps:$4 sm:$0xff]  }
 0x615   : > { %3768 = vrot.lane.b32.xlu0 %v3767_v25, %s4131_s17  ;;  %v3623_v29 = vpop.f32.mrb[35].mxu1  ;;  %v3828_v25 = vld [vmem:[%s4398_s26 + $0x20] ss:$16 sps:$4 sm:$0xff]  }
 0x616   : > { %2382 = vmatpush1.bf16.msra.mxu1 %v3828_v25  ;;  %v3877_v25 = vld [vmem:[%s4450_s30 + $0x88] sm:$0xff]  }
 0x61a   : > { %v1877_v30 = vpop.f32.mrb[36].mxu1 }
 0x61b   : > { %v3634_v31 = vpop.f32.mrb[37].mxu1 }
 0x61c   : > { %v1880_v32 = vpop.f32.mrb[38].mxu1 }
 0x61d   : > { %v3635_v33 = vpop.f32.mrb[39].mxu1 }
 0x622   : > { %v1969_v34 = vpop.f32.mrb[40].mxu1 }
 0x623   : > { %v3646_v35 = vpop.f32.mrb[41].mxu1 }
 0x624   : > { %v1972_v36 = vpop.f32.mrb[42].mxu1  ;;  %v3839_v35 = vld [vmem:[%s4398_s26 + $0x4c] ss:$16 sps:$4 sm:$0xff]  }
 0x625   : > { %v3647_v38 = vpop.f32.mrb[43].mxu1  ;;  %v3834_v36 = vld [vmem:[%s4398_s26 + $0x40] ss:$16 sps:$4 sm:$0xff]  }
 0x626   : > { %v3837_v38 = vld [vmem:[%s4398_s26 + $0x48] ss:$16 sps:$4 sm:$0xff]  }
 0x63f   : > { %v1831_v42 = vpop.f32.mrb[20].mxu0 }
 0x640   : > { %v3772_v39 = vpack.i.bf16 %v1877_v30, %v1831_v42  ;;  %v3628_v44 = vpop.f32.mrb[21].mxu0  ;;  %v3840_v42 = vld [vmem:[%s4398_s26 + $0x60] ss:$16 sps:$4 sm:$0xff]  }
 0x641   : > { %v1834_v45 = vpop.f32.mrb[22].mxu0  ;;  %v3851_v44 = vld [vmem:[%s4398_s26 + $0x8c] ss:$16 sps:$4 sm:$0xff]  }
 0x642   : > { %v3629_v47 = vpop.f32.mrb[23].mxu0  ;;  %3773 = vrot.lane.b32.xlu1 %v3772_v39, %s4130_s29  ;;  %v3848_v39 = vld [vmem:[%s4398_s26 + $0x84] ss:$16 sps:$4 sm:$0xff]   ;;  %v3846_v45 = vld [vmem:[%s4398_s26 + $0x80] ss:$16 sps:$4 sm:$0xff]  }
 0x643   : > { %v3849_v47 = vld [vmem:[%s4398_s26 + $0x88] ss:$16 sps:$4 sm:$0xff]  }
 0x647   : > { %v1923_v48 = vpop.f32.mrb[24].mxu0 }
 0x648   : > { %v3777_v50 = vpack.i.bf16 %v1969_v34, %v1923_v48  ;;  %v3640_v52 = vpop.f32.mrb[25].mxu0  ;;  %v3836_v34 = vld [vmem:[%s4398_s26 + $0x44] ss:$16 sps:$4 sm:$0xff]  }
 0x649   : > { %v1926_v49 = vpop.f32.mrb[26].mxu0  ;;  %2383 = vmatprep.subr.bf16.mxu1 %v3836_v34  ;;  %v3854_v48 = vld [vmem:[%s4398_s26 + $0xa4] ss:$16 sps:$4 sm:$0xff]   ;;  %v3852_v52 = vld [vmem:[%s4398_s26 + $0xa0] ss:$16 sps:$4 sm:$0xff]  }
 0x64a   : > { %v3641_v51 = vpop.f32.mrb[27].mxu0  ;;  %3778 = vrot.lane.b32.xlu0 %v3777_v50, %s4129_s27  ;;  %2384 = vmatpush1.bf16.msra.mxu1 %v3834_v36  ;;  %v3857_v50 = vld [vmem:[%s4398_s26 + $0xac] ss:$16 sps:$4 sm:$0xff]   ;;  %v3855_v49 = vld [vmem:[%s4398_s26 + $0xa8] ss:$16 sps:$4 sm:$0xff]   ;;  %v3887_v34 = vld [vmem:[%s4450_s30 + $0xe0] sm:$0xff]  }
 0x64b   : > { %2385 = vmatprep.subr.bf16.mxu1 %v3842_v40  ;;  %v3858_v51 = vld [vmem:[%s4398_s26 + $0xc0] ss:$16 sps:$4 sm:$0xff]   ;;  %v3891_v40 = vld [vmem:[%s4450_s30 + $0xe8] sm:$0xff]  }
 0x64c   : > { %v3889_v36 = vld [vmem:[%s4450_s30 + $0xa0] sm:$0xff]  }
 0x64e   : > { %2386 = vmatpush1.bf16.msra.mxu1 %v3840_v42  ;;  %v3893_v42 = vld [vmem:[%s4450_s30 + $0xa8] sm:$0xff]  }
 0x64f   : > { %2387 = vmatprep.subr.bf16.mxu1 %v3848_v39  ;;  %v3895_v39 = vld [vmem:[%s4450_s30 + $0xf0] sm:$0xff]  }
 0x652   : > { %2388 = vmatpush1.bf16.msra.mxu1 %v3846_v45  ;;  %v3897_v45 = vld [vmem:[%s4450_s30 + $0xb0] sm:$0xff]  }
 0x653   : > { %2389 = vmatprep.subr.bf16.mxu1 %v3854_v48  ;;  %v3899_v48 = vld [vmem:[%s4450_s30 + $0xf8] sm:$0xff]  }
 0x656   : > { %2390 = vmatpush1.bf16.msra.mxu1 %v3852_v52  ;;  %v3901_v52 = vld [vmem:[%s4450_s30 + $0xb8] sm:$0xff]  }
 0x687   : > { %v3769_v53 = vpop.permute.xlu0 %3768 }
 0x688   : > { %v3771_v55 = vunpack.i.h.bf16 %v3769_v53  ;;  %v3770_v11 = vunpack.i.l.bf16 %v3769_v53  ;;  %v3860_v53 = vld [vmem:[%s4398_s26 + $0xc4] ss:$16 sps:$4 sm:$0xff]  }
 0x689   : > { %2391 = vmatprep.subr.bf16.mxu1 %v3860_v53 }
 0x68a   : > { %v2000_v59 = vsel %vm1140_vm3, %v4685_v12, %v3771_v55  ;;  %v1999_v60 = vsel %vm1140_vm3, %v4683_v7, %v3770_v11  ;;  %v3333_v7 = vld [vmem:[%s4945_s15] ss:$0 sm:$0xff]  ;;  %v3863_v55 = vld [vmem:[%s4398_s26 + $0xcc] ss:$16 sps:$4 sm:$0xff]   ;;  %v3866_v11 = vld [vmem:[%s4398_s26 + $0xe4] ss:$16 sps:$4 sm:$0xff]   ;;  %2392 = vmatpush1.bf16.msra.mxu1 %v3858_v51 }
 0x68b   : > { %2393 = vmatprep.subr.bf16.mxu1 %v3866_v11  ;;  %v2213_v51 = vsub.s32 3, %v4520_v61 }
 0x6b4   : > { %v3774_v54 = vpop.permute.xlu1 %3773 }
 0x6b5   : > { %v3776_v56 = vunpack.i.h.bf16 %v3774_v54  ;;  %v3775_v57 = vunpack.i.l.bf16 %v3774_v54  ;;  %v3861_v54 = vld [vmem:[%s4398_s26 + $0xc8] ss:$16 sps:$4 sm:$0xff]  }
 0x6b7   : > { %v2003_v3 = vsel %vm2001_vm6, %v2000_v59, %v3776_v56  ;;  %v2002_v4 = vsel %vm2001_vm6, %v1999_v60, %v3775_v57  ;;  %v3869_v56 = vld [vmem:[%s4398_s26 + $0xec] ss:$16 sps:$4 sm:$0xff]   ;;  %v3864_v57 = vld [vmem:[%s4398_s26 + $0xe0] ss:$16 sps:$4 sm:$0xff]  }
 0x6b8   : > { %2394 = vmatpush1.bf16.msra.mxu1 %v3864_v57 }
 0x6bc   : > { %v3779_v58 = vpop.permute.xlu0 %3778 }
 0x6bd   : > { %v3781_v63 = vunpack.i.h.bf16 %v3779_v58  ;;  %v3780_v1 = vunpack.i.l.bf16 %v3779_v58  ;;  %v3867_v58 = vld [vmem:[%s4398_s26 + $0xe8] ss:$16 sps:$4 sm:$0xff]  }
 0x6bf   : > { %v2006_v2 = vsel %vm2004_vm7, %v2003_v3, %v3781_v63  ;;  %v2005_v5 = vsel %vm2004_vm7, %v2002_v4, %v3780_v1 }
 0x6c0   : > { %v2007_v6 = vpack.c.bf16 %v2006_v2, %v2005_v5 }
 0x6c2   : > { %3665 = vmatmul.mubr.bf16.vlgmr.msra.gmra.mrb[28].mxu0 %v2007_v6  ;;  %v3334_v6 = vld [vmem:[%s4946_s23] ss:$0 sm:$0xff] }
 0x6c3   : > { %2454 = vmatprep.mubr.bf16.mxu0 %v4127_v37  ;;  %2423 = vmatpush1.bf16.msra.mxu0 %v3825_v21  ;;  %v3873_v21 = vld [vmem:[%s4450_s30 + $0x80] sm:$0xff]  }
 0x6c4   : > { %2424 = vmatprep.subr.bf16.mxu0 %v3833_v16  ;;  %v3876_v16 = vld [vmem:[%s4450_s30 + $0x8] sm:$0xff]  }
 0x6c7   : > { %2425 = vmatpush1.bf16.msra.mxu0 %v3831_v26  ;;  %v3878_v26 = vld [vmem:[%s4450_s30 + $0x50] sm:$0xff]  }
 0x6c8   : > { %2426 = vmatprep.subr.bf16.mxu0 %v3839_v35  ;;  %v3888_v35 = vld [vmem:[%s4450_s30 + $0x20] sm:$0xff]  }
 0x6cb   : > { %2427 = vmatpush1.bf16.msra.mxu0 %v3837_v38  ;;  %v3890_v38 = vld [vmem:[%s4450_s30 + $0x68] sm:$0xff]  }
 0x6cc   : > { %2428 = vmatprep.subr.bf16.mxu0 %v3845_v41  ;;  %v3892_v41 = vld [vmem:[%s4450_s30 + $0x28] sm:$0xff]  }
 0x6cf   : > { %2429 = vmatpush1.bf16.msra.mxu0 %v3843_v43  ;;  %v3894_v43 = vld [vmem:[%s4450_s30 + $0x70] sm:$0xff]  }
 0x6d0   : > { %2430 = vmatprep.subr.bf16.mxu0 %v3851_v44  ;;  %v3896_v44 = vld [vmem:[%s4450_s30 + $0x30] sm:$0xff]  }
 0x6d3   : > { %2431 = vmatpush1.bf16.msra.mxu0 %v3849_v47  ;;  %v3898_v47 = vld [vmem:[%s4450_s30 + $0x78] sm:$0xff]  }
 0x6d4   : > { %2432 = vmatprep.subr.bf16.mxu0 %v3857_v50  ;;  %v3900_v50 = vld [vmem:[%s4450_s30 + $0x38] sm:$0xff]  }
 0x6d7   : > { %2433 = vmatpush1.bf16.msra.mxu0 %v3855_v49  ;;  %v2197_v49 = vld [vmem:[%s4444_s6] sm:$0xf] }
 0x6d8   : > { %2434 = vmatprep.subr.bf16.mxu0 %v3863_v55  ;;  %v2202_v53 = vrot.slane %v2197_v49, %v866_v62  ;;  %v2206_v55 = vrot.slane %v2197_v49, %v870_v0  ;;  %v2214_v11 = vrot.slane %v2197_v49, %v2213_v51 }
 0x6db   : > { %2435 = vmatpush1.bf16.msra.mxu0 %v3861_v54  ;;  %v2210_v54 = vrot.slane %v2197_v49, %v874_v27 }
 0x6dc   : > { %2436 = vmatprep.subr.bf16.mxu0 %v3869_v56 }
 0x6df   : > { %2437 = vmatpush1.bf16.msra.mxu0 %v3867_v58 }
 0x6e0   : > { %3498 = vmatprep.subr.bf16.mxu0 %v3871_v19 }
 0x795   : > { %v2106_v8 = vpop.f32.mrb[28].mxu0 }
 0x796   : > { %v2113_v10 = vadd.f32 %v3974_v9, %v2106_v8  ;;  %v3666_v12 = vpop.f32.mrb[29].mxu0 }
 0x797   : > { %v2109_v13 = vpop.f32.mrb[30].mxu0 }
 0x798   : > { %v4715_v14 = vadd.f32 %v3333_v7, %v2113_v10  ;;  %v2114_v17 = vadd.f32 %v3975_v15, %v2109_v13  ;;  %v3667_v37 = vpop.f32.mrb[31].mxu0  ;;  %v3335_v10 = vld [vmem:[%s761_s12] ss:$0 sm:$0xff] }
 0x799   : > { %v3870_v37 = vld [vmem:[%s4450_s30 + $0x40] sm:$0xff]  }
 0x79a   : > { %v4717_v18 = vadd.f32 %v3333_v7, %v2114_v17  ;;  %2126 = vadd.xlane.f32.xlu1 %v4715_v14  ;;  %3476 = vmatprep.subr.bf16.mxu1 %v3870_v37 }
 0x79c   : > { %2128 = vadd.xlane.f32.xlu0 %v4717_v18 }
 0x827   : > { %v2127_v28 = vpop.xlane.xlu1 %2126 }
 0x828   : > { %v2130_v22 = vmul.f32 0.0078125, %v2127_v28  ;;  %v3879_v28 = vld [vmem:[%s4450_s30 + $0xd0] sm:$0xff]  }
 0x829   : > { %v2129_v29 = vpop.xlane.xlu0 %2128 }
 0x82a   : > { %v4730_v46 = vsub.f32 %v4715_v14, %v2130_v22  ;;  %v2131_v30 = vmul.f32 0.0078125, %v2129_v29  ;;  %v3880_v22 = vld [vmem:[%s4450_s30 + $0x10] sm:$0xff]  }
 0x82b   : > { %v3881_v29 = vld [vmem:[%s4450_s30 + $0x90] sm:$0xff]  }
 0x82c   : > { %v4733_v31 = vsub.f32 %v4717_v18, %v2131_v30  ;;  %v2134_v32 = vmul.f32 %v4730_v46, %v4730_v46  ;;  %v3883_v30 = vld [vmem:[%s4450_s30 + $0xd8] sm:$0xff]  }
 0x82e   : > { %2136 = vadd.xlane.f32.xlu0 %v2134_v32  ;;  %v2135_v33 = vmul.f32 %v4733_v31, %v4733_v31  ;;  %v3885_v32 = vld [vmem:[%s4450_s30 + $0x98] sm:$0xff]  }
 0x832   : > { %2138 = vadd.xlane.f32.xlu0 %v2135_v33  ;;  %v3886_v33 = vld [vmem:[%s4450_s30 + $0x60] sm:$0xff]  }
 0x8bb   : > { %v2137_v59 = vpop.xlane.xlu0 %2136 }
 0x8bc   : > { %v2140_v60 = vmul.f32 0.0078125, %v2137_v59 }
 0x8be   : > { %v2142_v63 = vadd.f32 1e-05, %v2140_v60 }
 0x8bf   : > { %v2139_v1 = vpop.xlane.xlu0 %2138 }
 0x8c0   : > { %3938 = vrsqrt.f32 %v2142_v63  ;;  %v2141_v3 = vmul.f32 0.0078125, %v2139_v1 }
 0x8c2   : > { %v2143_v4 = vadd.f32 1e-05, %v2141_v3 }
 0x8c4   : > { %3940 = vrsqrt.f32 %v2143_v4 }
 0x8ca   : > { %v3939_v2 = vpop.eup %3938 }
 0x8cb   : > { %v2146_v5 = vmul.f32 %v3939_v2, %v4730_v46  ;;  %v3882_v46 = vld [vmem:[%s4450_s30 + $0x58] sm:$0xff]  }
 0x8cd   : > { %v2154_v9 = vmul.f32 %v3334_v6, %v2146_v5 }
 0x8ce   : > { %v3941_v8 = vpop.eup %3940 }
 0x8cf   : > { %v2147_v7 = vmul.f32 %v3941_v8, %v4733_v31  ;;  %v2162_v13 = vadd.f32 %v3335_v10, %v2154_v9  ;;  %v3884_v31 = vld [vmem:[%s4450_s30 + $0x18] sm:$0xff]  }
 0x8d1   : > { %v2155_v12 = vmul.f32 %v3334_v6, %v2147_v7 }
 0x8d3   : > { %v2163_v15 = vadd.f32 %v3335_v10, %v2155_v12 }
 0x8d5   : > { %v2164_v17 = vpack.c.bf16 %v2163_v15, %v2162_v13 }
 0x8d7   : > { %2412 = vmatmul.mubr.bf16.vlgmr.msra.gmra.mrb[44].mxu1 %v2164_v17  ;;  %2455 = vmatmul.mubr.bf16.vlgmr.msra.gmra.mrb[32].mxu0 %v2164_v17 }
 0x8d8   : > { %3477 = vmatpush3.bf16.msra.mxu1 %v3872_v20  ;;  %3499 = vmatpush3.bf16.msra.mxu0 %v3873_v21 }
 0x8d9   : > { %3478 = vmatprep.subr.bf16.mxu1 %v3874_v23  ;;  %3500 = vmatprep.subr.bf16.mxu0 %v3875_v24 }
 0x8dc   : > { %3479 = vmatpush3.bf16.msra.mxu1 %v3876_v16  ;;  %3501 = vmatpush3.bf16.msra.mxu0 %v3877_v25 }
 0x8dd   : > { %3480 = vmatprep.subr.bf16.mxu1 %v3878_v26  ;;  %3502 = vmatprep.subr.bf16.mxu0 %v3879_v28 }
 0x8e0   : > { %3481 = vmatpush3.bf16.msra.mxu1 %v3880_v22  ;;  %3503 = vmatpush3.bf16.msra.mxu0 %v3881_v29 }
 0x8e1   : > { %3482 = vmatprep.subr.bf16.mxu1 %v3882_v46  ;;  %3504 = vmatprep.subr.bf16.mxu0 %v3883_v30 }
 0x8e4   : > { %3483 = vmatpush3.bf16.msra.mxu1 %v3884_v31  ;;  %3505 = vmatpush3.bf16.msra.mxu0 %v3885_v32 }
 0x8e5   : > { %3484 = vmatprep.subr.bf16.mxu1 %v3886_v33  ;;  %3506 = vmatprep.subr.bf16.mxu0 %v3887_v34 }
 0x8e8   : > { %3485 = vmatpush3.bf16.msra.mxu1 %v3888_v35  ;;  %3507 = vmatpush3.bf16.msra.mxu0 %v3889_v36 }
 0x8e9   : > { %3486 = vmatprep.subr.bf16.mxu1 %v3890_v38  ;;  %3508 = vmatprep.subr.bf16.mxu0 %v3891_v40 }
 0x8ec   : > { %3487 = vmatpush3.bf16.msra.mxu1 %v3892_v41  ;;  %3509 = vmatpush3.bf16.msra.mxu0 %v3893_v42 }
 0x8ed   : > { %3488 = vmatprep.subr.bf16.mxu1 %v3894_v43  ;;  %3510 = vmatprep.subr.bf16.mxu0 %v3895_v39 }
 0x8f0   : > { %3489 = vmatpush3.bf16.msra.mxu1 %v3896_v44  ;;  %3511 = vmatpush3.bf16.msra.mxu0 %v3897_v45 }
 0x8f1   : > { %3490 = vmatprep.subr.bf16.mxu1 %v3898_v47  ;;  %3512 = vmatprep.subr.bf16.mxu0 %v3899_v48 }
 0x8f4   : > { %3491 = vmatpush3.bf16.msra.mxu1 %v3900_v50  ;;  %3513 = vmatpush3.bf16.msra.mxu0 %v3901_v52 }
 0x9aa   : > { %v2413_v56 = vpop.f32.mrb[44].mxu1  ;;  %v2456_v57 = vpop.f32.mrb[32].mxu0 }
 0x9ab   : > { %v4815_v58 = vadd.f32 %v2413_v56, %v2202_v53  ;;  %v4817_v59 = vadd.f32 %v2456_v57, %v2210_v54  ;;  %v2415_v60 = vpop.f32.mrb[45].mxu1  ;;  %v2458_v63 = vpop.f32.mrb[33].mxu0 }
 0x9ac   : > { %v4819_v1 = vadd.f32 %v2415_v60, %v2206_v55  ;;  %v4821_v3 = vadd.f32 %v2458_v63, %v2214_v11  ;;  %v2417_v62 = vpop.f32.mrb[46].mxu1  ;;  %v2460_v4 = vpop.f32.mrb[34].mxu0 }
 0x9ad   : > { %v3368_v27 = vmul.f32 -1.702, %v4815_v58  ;;  %v3370_v61 = vmul.f32 -1.702, %v4817_v59  ;;  %v2418_v0 = vadd.f32 %v2417_v62, %v2202_v53  ;;  %v2461_v2 = vadd.f32 %v2460_v4, %v2210_v54  ;;  %v2419_v5 = vpop.f32.mrb[47].mxu1  ;;  %v2462_v6 = vpop.f32.mrb[35].mxu0 }
 0x9ae   : > { %v3369_v8 = vmul.f32 -1.702, %v4819_v1  ;;  %v3371_v7 = vmul.f32 -1.702, %v4821_v3  ;;  %v2420_v9 = vadd.f32 %v2419_v5, %v2206_v55  ;;  %v2463_v10 = vadd.f32 %v2462_v6, %v2214_v11 }
 0x9af   : > { %v2481_v12 = vmul.f32 1.442695, %v3368_v27  ;;  %v2485_v13 = vmul.f32 1.442695, %v3370_v61  ;;  %v3372_v15 = vmul.f32 -1.702, %v2418_v0 }
 0x9b0   : > { %v2483_v17 = vmul.f32 1.442695, %v3369_v8  ;;  %v2487_v37 = vmul.f32 1.442695, %v3371_v7  ;;  %v3374_v19 = vmul.f32 -1.702, %v2461_v2 }
 0x9b1   : > { %3942 = vpow2.f32 %v2481_v12  ;;  %v2489_v20 = vmul.f32 1.442695, %v3372_v15  ;;  %v3373_v21 = vmul.f32 -1.702, %v2420_v9  ;;  %v3375_v23 = vmul.f32 -1.702, %v2463_v10 }
 0x9b2   : > { %3944 = vpow2.f32 %v2485_v13  ;;  %v2493_v24 = vmul.f32 1.442695, %v3374_v19 }
 0x9b3   : > { %3946 = vpow2.f32 %v2483_v17  ;;  %v2491_v16 = vmul.f32 1.442695, %v3373_v21  ;;  %v2495_v25 = vmul.f32 1.442695, %v3375_v23  ;;  %v4134_v21 = vmov (!%p3409_p7), 0.0   ;;  %v2886_v23 = vld [vmem:[%s4948_s20] sm:$0xff] (!%p3409_p7) }
 0x9b4   : > { %3948 = vpow2.f32 %v2487_v37  ;;  %3675 = vmatprep.subr.bf16.mxu1 (!%p3409_p7), %v4134_v21 }
 0x9b5   : > { %3950 = vpow2.f32 %v2489_v20  ;;  %v4132_v20 = vmov (!%p3409_p7), 0.0|0.0  }
 0x9b6   : > { %3952 = vpow2.f32 %v2493_v24  ;;  %3695 = vmatprep.subr.bf16.mxu0 (!%p3409_p7), %v4132_v20  ;;  %v3976_v24 = vld [vmem:[%s4949_s18] sm:$0xff] (!%p3409_p7)  }
 0x9b7   : > { %3954 = vpow2.f32 %v2491_v16  ;;  %v3977_v16 = vld [vmem:[%s4949_s18 + $0x8] sm:$0xff] (!%p3409_p7)  }
 0x9b8   : > { %3956 = vpow2.f32 %v2495_v25 }
 0x9bb   : > { %v3943_v26 = vpop.eup %3942 }
 0x9bc   : > { %v3945_v28 = vpop.eup %3944  ;;  %v2497_v22 = vadd.f32 1.0, %v3943_v26 }
 0x9bd   : > { %v3947_v29 = vpop.eup %3946  ;;  %v2499_v46 = vadd.f32 1.0, %v3945_v28 }
 0x9be   : > { %v3949_v30 = vpop.eup %3948  ;;  %3958 = vrcp.f32 %v2497_v22  ;;  %v2498_v31 = vadd.f32 1.0, %v3947_v29  ;;  %v3978_v29 = vld [vmem:[%s4949_s18 + $0x10] sm:$0xff] (!%p3409_p7)  }
 0x9bf   : > { %v3951_v32 = vpop.eup %3950  ;;  %3960 = vrcp.f32 %v2499_v46  ;;  %v2500_v33 = vadd.f32 1.0, %v3949_v30  ;;  %v3979_v46 = vld [vmem:[%s4949_s18 + $0x18] sm:$0xff] (!%p3409_p7)   ;;  %v3980_v30 = vld [vmem:[%s4949_s18 + $0x20] sm:$0xff] (!%p3409_p7)  }
 0x9c0   : > { %v3953_v34 = vpop.eup %3952  ;;  %3962 = vrcp.f32 %v2498_v31  ;;  %v2501_v35 = vadd.f32 1.0, %v3951_v32  ;;  %v3981_v31 = vld [vmem:[%s4949_s18 + $0x28] sm:$0xff] (!%p3409_p7)   ;;  %v3982_v32 = vld [vmem:[%s4949_s18 + $0x30] sm:$0xff] (!%p3409_p7)  }
 0x9c1   : > { %v3955_v36 = vpop.eup %3954  ;;  %3964 = vrcp.f32 %v2500_v33  ;;  %v2503_v38 = vadd.f32 1.0, %v3953_v34  ;;  %v3983_v33 = vld [vmem:[%s4949_s18 + $0x38] sm:$0xff] (!%p3409_p7)  }
 0x9c2   : > { %v3957_v40 = vpop.eup %3956  ;;  %3966 = vrcp.f32 %v2501_v35  ;;  %v2502_v41 = vadd.f32 1.0, %v3955_v36 }
 0x9c3   : > { %3968 = vrcp.f32 %v2503_v38  ;;  %v2504_v42 = vadd.f32 1.0, %v3957_v40  ;;  %v3411_v40 = vld [vmem:[%s4950_s13] ss:$0 sm:$0xff] (!%p3409_p7) }
 0x9c4   : > { %3970 = vrcp.f32 %v2502_v41 }
 0x9c5   : > { %3972 = vrcp.f32 %v2504_v42  ;;  %v3412_v42 = vld [vmem:[%s4951_s28] ss:$0 sm:$0xff] (!%p3409_p7) }
 0x9c8   : > { %v3959_v43 = vpop.eup %3958 }
 0x9c9   : > { %v3961_v39 = vpop.eup %3960  ;;  %v2521_v50 = vmul.f32 %v3959_v43, %v4815_v58 }
 0x9ca   : > { %v3963_v44 = vpop.eup %3962  ;;  %v2523_v51 = vmul.f32 %v3961_v39, %v4817_v59  ;;  %v3376_v59 = vld [vmem:[%s768_s14] ss:$0 sm:$0xff] }
 0x9cb   : > { %v3965_v45 = vpop.eup %3964  ;;  %v2522_v55 = vmul.f32 %v3963_v44, %v4819_v1 }
 0x9cc   : > { %v3967_v47 = vpop.eup %3966  ;;  %v2524_v57 = vmul.f32 %v3965_v45, %v4821_v3 }
 0x9cd   : > { %v3969_v48 = vpop.eup %3968  ;;  %v2525_v52 = vmul.f32 %v3967_v47, %v2418_v0 }
 0x9ce   : > { %v3971_v49 = vpop.eup %3970  ;;  %v2527_v53 = vmul.f32 %v3969_v48, %v2461_v2 }
 0x9cf   : > { %v3973_v54 = vpop.eup %3972  ;;  %v2529_v11 = vpack.c.bf16 %v2525_v52, %v2521_v50  ;;  %v2526_v56 = vmul.f32 %v3971_v49, %v2420_v9 }
 0x9d0   : > { %v2531_v60 = vpack.c.bf16 %v2527_v53, %v2523_v51  ;;  %v2528_v63 = vmul.f32 %v3973_v54, %v2463_v10 }
 0x9d1   : > { %v2530_v62 = vpack.c.bf16 %v2526_v56, %v2522_v55 }
 0x9d2   : > { %v2532_v4 = vpack.c.bf16 %v2528_v63, %v2524_v57 }
 0x9d3   : > { %2828 = vmatprep.mubr.bf16.mxu1 %v2530_v62 }
 0x9d4   : > { %2869 = vmatprep.mubr.bf16.mxu0 %v2532_v4  ;;  %2829 = vmatmul.mubr.bf16.vlgmr.msra.gmra.mrb[48].mxu1 %v2529_v11 }
 0x9d5   : > { %2870 = vmatmul.mubr.bf16.vlgmr.msra.gmra.mrb[36].mxu0 %v2531_v60  ;;  %3691 = vmatprep.mubr.msk.bf16.mxu1 (!%p3409_p7), %vm4133_vm8, %v4134_v21 }
 0x9d6   : > { %3672 = vmatprep.mubr.msk.f32.mxu0 (!%p3409_p7), %vm4133_vm8, %v4134_v21  ;;  %3676 = vmatpush3.bf16.msra.mxu1 (!%p3409_p7), %v3976_v24 }
 0x9d7   : > { %3677 = vmatprep.subr.bf16.mxu1 (!%p3409_p7), %v4134_v21 }
 0x9da   : > { %3678 = vmatpush3.bf16.msra.mxu1 (!%p3409_p7), %v3977_v16 }
 0x9db   : > { %3679 = vmatprep.subr.bf16.mxu1 (!%p3409_p7), %v4134_v21 }
 0x9de   : > { %3680 = vmatpush3.bf16.msra.mxu1 (!%p3409_p7), %v3978_v29 }
 0x9df   : > { %3681 = vmatprep.subr.bf16.mxu1 (!%p3409_p7), %v4134_v21 }
 0x9e2   : > { %3682 = vmatpush3.bf16.msra.mxu1 (!%p3409_p7), %v3979_v46 }
 0x9e3   : > { %3683 = vmatprep.subr.bf16.mxu1 (!%p3409_p7), %v4134_v21 }
 0x9e6   : > { %3684 = vmatpush3.bf16.msra.mxu1 (!%p3409_p7), %v3980_v30 }
 0x9e7   : > { %3685 = vmatprep.subr.bf16.mxu1 (!%p3409_p7), %v4134_v21 }
 0x9ea   : > { %3686 = vmatpush3.bf16.msra.mxu1 (!%p3409_p7), %v3981_v31 }
 0x9eb   : > { %3687 = vmatprep.subr.bf16.mxu1 (!%p3409_p7), %v4134_v21 }
 0x9ee   : > { %3688 = vmatpush3.bf16.msra.mxu1 (!%p3409_p7), %v3982_v32 }
 0x9ef   : > { %3689 = vmatprep.subr.bf16.mxu1 (!%p3409_p7), %v4134_v21 }
 0x9f2   : > { %3690 = vmatpush3.bf16.msra.mxu1 (!%p3409_p7), %v3983_v33 }
 0xaa7   : > { %v3492_v58 = vpop.f32.mrb[48].mxu1 }
 0xaa8   : > { %v3514_v27 = vpop.f32.mrb[36].mxu0  ;;  %v3493_v1 = vpop.f32.mrb[49].mxu1 }
 0xaa9   : > { %v3494_v61 = vadd.f32 %v3493_v1, %v3492_v58  ;;  %v3515_v0 = vpop.f32.mrb[37].mxu0  ;;  %v3495_v2 = vpop.f32.mrb[50].mxu1 }
 0xaaa   : > { %v3516_v3 = vadd.f32 %v3515_v0, %v3514_v27  ;;  %v3517_v5 = vpop.f32.mrb[38].mxu0  ;;  %v3496_v6 = vpop.f32.mrb[51].mxu1 }
 0xaab   : > { %v2831_v8 = vadd.f32 %v3494_v61, %v3376_v59  ;;  %v3497_v7 = vadd.f32 %v3496_v6, %v3495_v2  ;;  %v3518_v9 = vpop.f32.mrb[39].mxu0 }
 0xaac   : > { %v3519_v10 = vadd.f32 %v3518_v9, %v3517_v5 }
 0xaad   : > { %v2872_v12 = vadd.f32 %v3516_v3, %v2831_v8  ;;  %v2834_v13 = vadd.f32 %v3497_v7, %v3376_v59  ;;  %2885 = sbr.rel (%p3409_p7) target bundleno = 3484 (0xd9c), region = 108 }
 0xaaf   : > { %v2878_v15 = vadd.f32 %v2872_v12, %v4715_v14  ;;  %v2875_v17 = vadd.f32 %v3519_v10, %v2834_v13 }
 0xab1   : > { %2880 = vst [vmem:[#allocation2] sm:$0xff] %v2878_v15  ;;  %v2879_v37 = vadd.f32 %v2875_v17, %v4717_v18 }
 0xab3   : > { %2881 = vst [vmem:[#allocation2 + $0x8] sm:$0xff] %v2879_v37  ;;  %v3696_v19 = vpack.c.bf16 (!%p3409_p7), %v2879_v37, %v2878_v15 }
 0xab5   : > { %3697 = vmatpush3.bf16.msra.mxu0 %v3696_v19 }
 0xab8   : > { %3673 = vmatmul.mubr.msk.f32.vlgmr.msra.gmra.mrb[0].mxu0 %vm2887_vm9, %v2886_v23 }
 0xb8b   : > { %v2957_v14 = vpop.f32.mrb[0].mxu0 }
 0xb8c   : > { %2963 = vadd.xlane.f32.xlu0 %v2957_v14  ;;  %v3674_v18 = vpop.f32.mrb[1].mxu0 }
 0xc19   : > { %v2964_v25 = vpop.xlane.xlu0 %2963 }
 0xc1a   : > { %v2965_v26 = vmul.f32 0.0078125, %v2964_v25 }
 0xc1c   : > { %v2966_v28 = vsub.f32 %v2957_v14, %v2965_v26 }
 0xc1e   : > { %v2967_v22 = vmul.f32 %v2966_v28, %v2966_v28 }
 0xc20   : > { %2968 = vadd.xlane.f32.xlu0 %v2967_v22 }
 0xcad   : > { %v2969_v34 = vpop.xlane.xlu0 %2968 }
 0xcae   : > { %v2970_v35 = vmul.f32 0.0078125, %v2969_v34 }
 0xcb0   : > { %v2971_v36 = vadd.f32 1e-05, %v2970_v35 }
 0xcb2   : > { %3984 = vrsqrt.f32 %v2971_v36 }
 0xcbc   : > { %v3985_v38 = vpop.eup %3984 }
 0xcbd   : > { %v2973_v41 = vmul.f32 %v3985_v38, %v2966_v28 }
 0xcbf   : > { %v2980_v43 = vmul.f32 %v3411_v40, %v2973_v41 }
 0xcc1   : > { %v2987_v39 = vadd.f32 %v3412_v42, %v2980_v43 }
 0xcc3   : > { %v2988_v44 = vpack.c.bf16 %v2987_v39, %v2987_v39 }
 0xcc5   : > { %3692 = vmatmul.mubr.bf16.vlgmr.msra.gmra.mrb[0].mxu1 %v2988_v44 }
 0xd98   : > { %v3087_v45 = vpop.f32.mrb[0].mxu1 }
 0xd99   : > { %3093 = vst [vmem:[%s4952_s0] sm:$0xff] %v3087_v45  ;;  %v3693_v47 = vpop.f32.mrb[1].mxu1 }
 0xd9a   : > { %v3090_v48 = vpop.f32.mrb[2].mxu1 }
 0xd9b   : > { %v3694_v50 = vpop.f32.mrb[3].mxu1 }
 0xd9c PF: > { %s4953_s27 = sld [smem:[#allocation12_spill]]  ;;  %s4954_s29 = sld [smem:[#allocation11_spill]] }
 0xd9d   : > { %s4955_s26 = sld [smem:[#allocation13_spill]]  ;;  %s4956_s24 = smov %s4106_s25 }
 0xda2   : > { %p30_p12 = scmp.ge.s32.totalorder %s4953_s27, 4   ;;  %s4957_s25 = smov %s4954_s29 }
 0xda4   :  { %32 = sbr.rel (!%p30_p12) target bundleno = 17 (0x11), region = 183 }
 0xdab   :  { %3105 = vsyncpa [#allocation5], 1 }
 0xdac   :  { %3107 = vsyncpa [#allocation5 + $0x1], 1 }
 0xdad   :  { %3108 = vsyncpa [#allocation7], 1 }
 0xdae   :  { %3110 = vsyncpa [#allocation7 + $0x1], 1 }

</bundles_post_ra>
